<compile_context>
chip_gen: v6e
topology: v6e:2x2x1
jax: 0.10.0
libtpu: 0.0.40
codegen_flags: <defaults>
</compile_context>

<pallas_src>
import functools

import jax
import jax.numpy as jnp
from jax.experimental import pallas as pl
from jax.experimental.pallas import tpu as pltpu

NUM_BOND_TYPE = 6
NUM_BOND_DIRECTION = 3
NUM_ATOM_TYPE = 120
NUM_CHIRALITY_TAG = 3
BN_EPS = 1e-5


# ---------------------------------------------------------------------------
# Fused Pallas kernel
# ---------------------------------------------------------------------------
def _bn_cols(x, gamma, beta):
    """BatchNorm1d over the batch (row) axis: batch stats, biased var, affine."""
    mean = jnp.mean(x, axis=0, keepdims=True)
    var = jnp.mean((x - mean) ** 2, axis=0, keepdims=True)
    return (x - mean) * jax.lax.rsqrt(var + BN_EPS) * gamma + beta


def fused_encoder_kernel(h0_ref, oh_ref, src_ref, dst_ref, ind_ref,
                         eemb_ref, w1_ref, b1_ref, w2_ref, b2_ref,
                         g1_ref, be1_ref, wp_ref, bp_ref, g2_ref, be2_ref,
                         o_ref, *, embed_dim, num_layers):
    d = embed_dim
    ns = h0_ref.shape[0]          # subgraph nodes
    e = src_ref.shape[0]          # padded edge count (incl. self loops)
    n = oh_ref.shape[0]           # original nodes

    # ---- build bf16 one-hot gather/scatter operands once, on-chip (VPU only) ----
    # gsrc[e, s] = (src[e] == s)   : gathers h[src] via matmul
    lane_ns = jax.lax.broadcasted_iota(jnp.int32, (e, ns), 1)
    gsrc = jnp.where(lane_ns == src_ref[...], 1.0, 0.0).astype(jnp.bfloat16)
    # sdst[s, e] = (dst[e] == s)   : scatter-add onto destination nodes (dup-safe)
    sub_ns = jax.lax.broadcasted_iota(jnp.int32, (ns, e), 0)
    sdst = jnp.where(sub_ns == dst_ref[...], 1.0, 0.0).astype(jnp.bfloat16)
    # pool[n, s] = (indicator[s] == n) : k-hop subgraph scatter_add onto originals
    pool_ns = jax.lax.broadcasted_iota(jnp.int32, (n, ns), 0)
    pool = jnp.where(pool_ns == ind_ref[...], 1.0, 0.0).astype(jnp.bfloat16)

    # ---- k GIN layers (message = x_j + edge_emb ; add-aggregate ; MLP ; outer ReLU) ----
    h = h0_ref[...]
    for l in range(num_layers):                       # static unroll, weights stay in VMEM
        msg = jnp.dot(gsrc, h.astype(jnp.bfloat16),
                      preferred_element_type=jnp.float32) + eemb_ref[l]     # (E, D)
        aggr = jnp.dot(sdst, msg.astype(jnp.bfloat16),
                       preferred_element_type=jnp.float32)                  # (Ns, D)
        z = jnp.dot(aggr, w1_ref[l], preferred_element_type=jnp.float32) + b1_ref[l]
        z = jnp.maximum(z, 0.0)
        h = jnp.dot(z, w2_ref[l], preferred_element_type=jnp.float32) + b2_ref[l]
        h = jnp.maximum(h, 0.0)

    # ---- k-hop pooling (scatter_add over subgraph_indicator_index) ----
    x_agg = jnp.dot(pool, h.astype(jnp.bfloat16),
                    preferred_element_type=jnp.float32)                     # (N, D)

    # ---- concat([origin, x_struct]) -> BN(2D) -> Linear(2D,D) computed half-by-half
    # (BN is per-feature, and x_cat @ Wp = x_left @ Wp[:D] + x_right @ Wp[D:]) ----
    xa = _bn_cols(oh_ref[...], g1_ref[:, :d], be1_ref[:, :d])
    xb = _bn_cols(x_agg,       g1_ref[:, d:], be1_ref[:, d:])
    y = (jnp.dot(xa, wp_ref[:d, :], preferred_element_type=jnp.float32)
         + jnp.dot(xb, wp_ref[d:, :], preferred_element_type=jnp.float32)
         + bp_ref[...])                                                     # (N, D)

    # ---- final BatchNorm(D) ----
    o_ref[...] = _bn_cols(y, g2_ref[...], be2_ref[...])


# ---------------------------------------------------------------------------
# Parameter construction (deterministic synthetic init)
# ---------------------------------------------------------------------------
def init_params(key, embed_dim, k_hop):
    d = embed_dim
    ks = iter(jax.random.split(key, 64))

    def rnd(shape, scale=0.1):
        return scale * jax.random.normal(next(ks), shape, dtype=jnp.float32)

    params = {
        "x_emb1": rnd((NUM_ATOM_TYPE, d)),
        "x_emb2": rnd((NUM_CHIRALITY_TAG, d)),
        "gin_layers": [],
        "bn1_gamma": jnp.ones((1, 2 * d), jnp.float32),
        "bn1_beta": jnp.zeros((1, 2 * d), jnp.float32),
        "wp": rnd((2 * d, d)),
        "bp": rnd((1, d)),
        "bn2_gamma": jnp.ones((1, d), jnp.float32),
        "bn2_beta": jnp.zeros((1, d), jnp.float32),
    }
    for _ in range(k_hop):
        params["gin_layers"].append({
            "edge_emb1": rnd((NUM_BOND_TYPE, d)),
            "edge_emb2": rnd((NUM_BOND_DIRECTION, d)),
            "w1": rnd((d, 2 * d)),
            "b1": rnd((1, 2 * d)),
            "w2": rnd((2 * d, d)),
            "b2": rnd((1, d)),
        })
    return params


# ---------------------------------------------------------------------------
# Forward pass (index / embedding glue in plain JAX, everything else in Pallas)
# ---------------------------------------------------------------------------
def graph_transformer_encoder_forward(params, x, subgraph_node_index,
                                      subgraph_edge_index, subgraph_edge_attr,
                                      subgraph_indicator_index, embed_dim):
    d = embed_dim
    n = x.shape[0]
    ns = subgraph_node_index.shape[0]
    k = len(params["gin_layers"])

    # --- node embeddings (integer gather glue) ---
    sub_tokens = x[subgraph_node_index]                                   # (Ns, 2)
    h_sub = params["x_emb1"][sub_tokens[:, 0]] + params["x_emb2"][sub_tokens[:, 1]]
    origin_h = params["x_emb1"][x[:, 0]] + params["x_emb2"][x[:, 1]]

    # --- add self loops (bond type 4, direction 0) to the subgraph edges ---
    src = subgraph_edge_index[0]
    dst = subgraph_edge_index[1]
    loop = jnp.arange(ns, dtype=src.dtype)
    src_full = jnp.concatenate([src, loop])
    dst_full = jnp.concatenate([dst, loop])
    self_loop_attr = jnp.stack(
        [jnp.full((ns,), 4, subgraph_edge_attr.dtype),
         jnp.zeros((ns,), subgraph_edge_attr.dtype)], axis=1)
    edge_attr_full = jnp.concatenate([subgraph_edge_attr, self_loop_attr], axis=0)

    # --- pad edge count to a multiple of 8 sublanes; padded edges get dst = ns,
    #     which matches no one-hot column -> they scatter nowhere (semantics preserved) ---
    e_tot = int(src_full.shape[0])
    e_pad = ((e_tot + 7) // 8) * 8
    pad = e_pad - e_tot
    src_full = jnp.concatenate([src_full, jnp.zeros((pad,), src_full.dtype)])
    dst_full = jnp.concatenate([dst_full, jnp.full((pad,), ns, dst_full.dtype)])
    edge_attr_full = jnp.concatenate(
        [edge_attr_full, jnp.zeros((pad, 2), edge_attr_full.dtype)], axis=0)

    # --- per-layer edge embeddings + stacked layer weights ---
    eemb = jnp.stack(
        [lp["edge_emb1"][edge_attr_full[:, 0]] + lp["edge_emb2"][edge_attr_full[:, 1]]
         for lp in params["gin_layers"]], axis=0)                          # (K, E, D)
    w1s = jnp.stack([lp["w1"] for lp in params["gin_layers"]], axis=0)     # (K, D, 2D)
    b1s = jnp.stack([lp["b1"] for lp in params["gin_layers"]], axis=0)     # (K, 1, 2D)
    w2s = jnp.stack([lp["w2"] for lp in params["gin_layers"]], axis=0)     # (K, 2D, D)
    b2s = jnp.stack([lp["b2"] for lp in params["gin_layers"]], axis=0)     # (K, 1, D)

    # --- index vectors in layouts matching their in-kernel broadcast axes ---
    src_col = src_full.astype(jnp.int32).reshape(e_pad, 1)                 # lanes broadcast
    dst_row = dst_full.astype(jnp.int32).reshape(1, e_pad)                 # sublane broadcast
    ind_row = subgraph_indicator_index.astype(jnp.int32).reshape(1, ns)

    args = (h_sub, origin_h, src_col, dst_row, ind_row,
            eemb, w1s, b1s, w2s, b2s,
            params["bn1_gamma"], params["bn1_beta"],
            params["wp"], params["bp"],
            params["bn2_gamma"], params["bn2_beta"])

    flops = k * (2 * e_pad * ns * d + 2 * ns * e_pad * d
                 + 2 * ns * d * 2 * d + 2 * ns * 2 * d * d)
    flops += 2 * n * ns * d + 2 * n * 2 * d * d
    bytes_accessed = sum(int(a.size) * a.dtype.itemsize for a in args) + n * d * 4

    vmem_specs = [pl.BlockSpec(memory_space=pltpu.MemorySpace.VMEM)] * len(args)

    return pl.pallas_call(
        functools.partial(fused_encoder_kernel, embed_dim=d, num_layers=k),
        out_shape=jax.ShapeDtypeStruct((n, d), jnp.float32),
        in_specs=vmem_specs,
        out_specs=pl.BlockSpec(memory_space=pltpu.MemorySpace.VMEM),
        compiler_params=pltpu.CompilerParams(vmem_limit_bytes=32 * 1024 * 1024),
        cost_estimate=pl.CostEstimate(flops=flops, transcendentals=3 * d,
                                      bytes_accessed=bytes_accessed),
    )(*args)


# ---------------------------------------------------------------------------
if __name__ == "__main__":
    EMBED_DIM = 128      # lane-dense (multiple of 128); 2D = 256 = MXU-friendly
    K_HOP = 2
    N_NODES = 8          # original graph nodes
    N_SUB = 16           # total subgraph nodes (2 per original node)
    N_EDGES = 20         # subgraph edges (before self loops)

    root = jax.random.PRNGKey(0)
    kp, k1, k2, k3, k4, k5 = jax.random.split(root, 6)

    params = init_params(kp, EMBED_DIM, K_HOP)

    # node features: [atom_type, chirality_tag]
    x = jnp.stack(
        [jax.random.randint(k1, (N_NODES,), 0, NUM_ATOM_TYPE),
         jax.random.randint(k2, (N_NODES,), 0, NUM_CHIRALITY_TAG)], axis=1
    ).astype(jnp.int32)

    # each original node contributes 2 subgraph nodes; indicator covers 0..N-1
    subgraph_node_index = jnp.concatenate(
        [jnp.arange(N_NODES, dtype=jnp.int32),
         jax.random.randint(k3, (N_SUB - N_NODES,), 0, N_NODES, dtype=jnp.int32)])
    subgraph_indicator_index = jnp.repeat(
        jnp.arange(N_NODES, dtype=jnp.int32), N_SUB // N_NODES)

    subgraph_edge_index = jax.random.randint(
        k4, (2, N_EDGES), 0, N_SUB, dtype=jnp.int32)
    subgraph_edge_attr = jnp.stack(
        [jax.random.randint(k5, (N_EDGES,), 0, NUM_BOND_TYPE),
         jax.random.randint(jax.random.fold_in(k5, 1), (N_EDGES,), 0,
                            NUM_BOND_DIRECTION)], axis=1).astype(jnp.int32)

    out = graph_transformer_encoder_forward(
        params, x, subgraph_node_index, subgraph_edge_index,
        subgraph_edge_attr, subgraph_indicator_index, EMBED_DIM)
    out = jax.block_until_ready(out)

    assert out.shape == (N_NODES, EMBED_DIM)
    assert bool(jnp.all(jnp.isfinite(out)))
    print("KERNEL_OK")
</pallas_src>

<mosaic_0001>
module attributes {stable_mosaic.version = 11 : i64} {
  func.func @fused_encoder_kernel(%arg0: memref<16x128xf32, #tpu.memory_space<vmem>>, %arg1: memref<8x128xf32, #tpu.memory_space<vmem>>, %arg2: memref<40x1xi32, #tpu.memory_space<vmem>>, %arg3: memref<1x40xi32, #tpu.memory_space<vmem>>, %arg4: memref<1x16xi32, #tpu.memory_space<vmem>>, %arg5: memref<2x40x128xf32, #tpu.memory_space<vmem>>, %arg6: memref<2x128x256xf32, #tpu.memory_space<vmem>>, %arg7: memref<2x1x256xf32, #tpu.memory_space<vmem>>, %arg8: memref<2x256x128xf32, #tpu.memory_space<vmem>>, %arg9: memref<2x1x128xf32, #tpu.memory_space<vmem>>, %arg10: memref<1x256xf32, #tpu.memory_space<vmem>>, %arg11: memref<1x256xf32, #tpu.memory_space<vmem>>, %arg12: memref<256x128xf32, #tpu.memory_space<vmem>>, %arg13: memref<1x128xf32, #tpu.memory_space<vmem>>, %arg14: memref<1x128xf32, #tpu.memory_space<vmem>>, %arg15: memref<1x128xf32, #tpu.memory_space<vmem>>, %arg16: memref<8x128xf32, #tpu.memory_space<vmem>>) attributes {dimension_semantics = [], scalar_prefetch = 0 : i64, scratch_operands = 0 : i64, tpu.core_type = #tpu.core_type<tc>} {
    %0 = tpu.iota {dimensions = array<i32: 1>} : vector<40x16xi32>
    %c0 = arith.constant 0 : index
    %c0_0 = arith.constant 0 : index
    %1 = vector.load %arg2[%c0, %c0_0] : memref<40x1xi32, #tpu.memory_space<vmem>>, vector<40x1xi32>
    %2 = vector.broadcast %1 : vector<40x1xi32> to vector<40x16xi32>
    %3 = arith.cmpi eq, %0, %2 : vector<40x16xi32>
    %cst = arith.constant 1.000000e+00 : f32
    %cst_1 = arith.constant 0.000000e+00 : f32
    %4 = vector.broadcast %cst : f32 to vector<40x16xf32>
    %5 = vector.broadcast %cst_1 : f32 to vector<40x16xf32>
    %6 = arith.select %3, %4, %5 : vector<40x16xi1>, vector<40x16xf32>
    %7 = arith.truncf %6 : vector<40x16xf32> to vector<40x16xbf16>
    %8 = tpu.iota {dimensions = array<i32: 0>} : vector<16x40xi32>
    %c0_2 = arith.constant 0 : index
    %c0_3 = arith.constant 0 : index
    %9 = vector.load %arg3[%c0_2, %c0_3] : memref<1x40xi32, #tpu.memory_space<vmem>>, vector<1x40xi32>
    %10 = vector.broadcast %9 : vector<1x40xi32> to vector<16x40xi32>
    %11 = arith.cmpi eq, %8, %10 : vector<16x40xi32>
    %cst_4 = arith.constant 1.000000e+00 : f32
    %cst_5 = arith.constant 0.000000e+00 : f32
    %12 = vector.broadcast %cst_4 : f32 to vector<16x40xf32>
    %13 = vector.broadcast %cst_5 : f32 to vector<16x40xf32>
    %14 = arith.select %11, %12, %13 : vector<16x40xi1>, vector<16x40xf32>
    %15 = arith.truncf %14 : vector<16x40xf32> to vector<16x40xbf16>
    %16 = tpu.iota {dimensions = array<i32: 0>} : vector<8x16xi32>
    %c0_6 = arith.constant 0 : index
    %c0_7 = arith.constant 0 : index
    %17 = vector.load %arg4[%c0_6, %c0_7] : memref<1x16xi32, #tpu.memory_space<vmem>>, vector<1x16xi32>
    %18 = vector.broadcast %17 : vector<1x16xi32> to vector<8x16xi32>
    %19 = arith.cmpi eq, %16, %18 : vector<8x16xi32>
    %cst_8 = arith.constant 1.000000e+00 : f32
    %cst_9 = arith.constant 0.000000e+00 : f32
    %20 = vector.broadcast %cst_8 : f32 to vector<8x16xf32>
    %21 = vector.broadcast %cst_9 : f32 to vector<8x16xf32>
    %22 = arith.select %19, %20, %21 : vector<8x16xi1>, vector<8x16xf32>
    %23 = arith.truncf %22 : vector<8x16xf32> to vector<8x16xbf16>
    %c0_10 = arith.constant 0 : index
    %c0_11 = arith.constant 0 : index
    %24 = vector.load %arg0[%c0_10, %c0_11] : memref<16x128xf32, #tpu.memory_space<vmem>>, vector<16x128xf32>
    %25 = arith.truncf %24 : vector<16x128xf32> to vector<16x128xbf16>
    %cst_12 = arith.constant dense<0.000000e+00> : vector<40x128xf32>
    %26 = tpu.matmul %7, %25, %cst_12 {dimension_numbers = #tpu.dot_dimension_numbers<[1], [0], [0], [1], [0, 0, 1, 1], [], []>} : vector<40x16xbf16>, vector<16x128xbf16>, vector<40x128xf32> -> vector<40x128xf32>
    %c0_13 = arith.constant 0 : index
    %c0_14 = arith.constant 0 : index
    %c0_15 = arith.constant 0 : index
    %27 = vector.load %arg5[%c0_13, %c0_14, %c0_15] : memref<2x40x128xf32, #tpu.memory_space<vmem>>, vector<1x40x128xf32>
    %28 = vector.shape_cast %27 : vector<1x40x128xf32> to vector<40x128xf32>
    %29 = arith.addf %26, %28 : vector<40x128xf32>
    %30 = arith.truncf %29 : vector<40x128xf32> to vector<40x128xbf16>
    %cst_16 = arith.constant dense<0.000000e+00> : vector<16x128xf32>
    %31 = tpu.matmul %15, %30, %cst_16 {dimension_numbers = #tpu.dot_dimension_numbers<[1], [0], [0], [1], [0, 0, 1, 1], [], []>} : vector<16x40xbf16>, vector<40x128xbf16>, vector<16x128xf32> -> vector<16x128xf32>
    %c0_17 = arith.constant 0 : index
    %c0_18 = arith.constant 0 : index
    %c0_19 = arith.constant 0 : index
    %32 = vector.load %arg6[%c0_17, %c0_18, %c0_19] : memref<2x128x256xf32, #tpu.memory_space<vmem>>, vector<1x128x256xf32>
    %33 = vector.shape_cast %32 : vector<1x128x256xf32> to vector<128x256xf32>
    %cst_20 = arith.constant dense<0.000000e+00> : vector<16x256xf32>
    %34 = tpu.matmul %31, %33, %cst_20 {dimension_numbers = #tpu.dot_dimension_numbers<[1], [0], [0], [1], [0, 0, 1, 1], [], []>} : vector<16x128xf32>, vector<128x256xf32>, vector<16x256xf32> -> vector<16x256xf32>
    %c0_21 = arith.constant 0 : index
    %c0_22 = arith.constant 0 : index
    %c0_23 = arith.constant 0 : index
    %35 = vector.load %arg7[%c0_21, %c0_22, %c0_23] : memref<2x1x256xf32, #tpu.memory_space<vmem>>, vector<1x1x256xf32>
    %36 = vector.shape_cast %35 : vector<1x1x256xf32> to vector<1x256xf32>
    %37 = vector.broadcast %36 : vector<1x256xf32> to vector<16x256xf32>
    %38 = arith.addf %34, %37 : vector<16x256xf32>
    %cst_24 = arith.constant 0.000000e+00 : f32
    %39 = vector.broadcast %cst_24 : f32 to vector<16x256xf32>
    %40 = arith.maximumf %38, %39 : vector<16x256xf32>
    %c0_25 = arith.constant 0 : index
    %c0_26 = arith.constant 0 : index
    %c0_27 = arith.constant 0 : index
    %41 = vector.load %arg8[%c0_25, %c0_26, %c0_27] : memref<2x256x128xf32, #tpu.memory_space<vmem>>, vector<1x256x128xf32>
    %42 = vector.shape_cast %41 : vector<1x256x128xf32> to vector<256x128xf32>
    %cst_28 = arith.constant dense<0.000000e+00> : vector<16x128xf32>
    %43 = tpu.matmul %40, %42, %cst_28 {dimension_numbers = #tpu.dot_dimension_numbers<[1], [0], [0], [1], [0, 0, 1, 1], [], []>} : vector<16x256xf32>, vector<256x128xf32>, vector<16x128xf32> -> vector<16x128xf32>
    %c0_29 = arith.constant 0 : index
    %c0_30 = arith.constant 0 : index
    %c0_31 = arith.constant 0 : index
    %44 = vector.load %arg9[%c0_29, %c0_30, %c0_31] : memref<2x1x128xf32, #tpu.memory_space<vmem>>, vector<1x1x128xf32>
    %45 = vector.shape_cast %44 : vector<1x1x128xf32> to vector<1x128xf32>
    %46 = vector.broadcast %45 : vector<1x128xf32> to vector<16x128xf32>
    %47 = arith.addf %43, %46 : vector<16x128xf32>
    %cst_32 = arith.constant 0.000000e+00 : f32
    %48 = vector.broadcast %cst_32 : f32 to vector<16x128xf32>
    %49 = arith.maximumf %47, %48 : vector<16x128xf32>
    %50 = arith.truncf %49 : vector<16x128xf32> to vector<16x128xbf16>
    %cst_33 = arith.constant dense<0.000000e+00> : vector<40x128xf32>
    %51 = tpu.matmul %7, %50, %cst_33 {dimension_numbers = #tpu.dot_dimension_numbers<[1], [0], [0], [1], [0, 0, 1, 1], [], []>} : vector<40x16xbf16>, vector<16x128xbf16>, vector<40x128xf32> -> vector<40x128xf32>
    %c1 = arith.constant 1 : index
    %c0_34 = arith.constant 0 : index
    %c0_35 = arith.constant 0 : index
    %52 = vector.load %arg5[%c1, %c0_34, %c0_35] : memref<2x40x128xf32, #tpu.memory_space<vmem>>, vector<1x40x128xf32>
    %53 = vector.shape_cast %52 : vector<1x40x128xf32> to vector<40x128xf32>
    %54 = arith.addf %51, %53 : vector<40x128xf32>
    %55 = arith.truncf %54 : vector<40x128xf32> to vector<40x128xbf16>
    %cst_36 = arith.constant dense<0.000000e+00> : vector<16x128xf32>
    %56 = tpu.matmul %15, %55, %cst_36 {dimension_numbers = #tpu.dot_dimension_numbers<[1], [0], [0], [1], [0, 0, 1, 1], [], []>} : vector<16x40xbf16>, vector<40x128xbf16>, vector<16x128xf32> -> vector<16x128xf32>
    %c1_37 = arith.constant 1 : index
    %c0_38 = arith.constant 0 : index
    %c0_39 = arith.constant 0 : index
    %57 = vector.load %arg6[%c1_37, %c0_38, %c0_39] : memref<2x128x256xf32, #tpu.memory_space<vmem>>, vector<1x128x256xf32>
    %58 = vector.shape_cast %57 : vector<1x128x256xf32> to vector<128x256xf32>
    %cst_40 = arith.constant dense<0.000000e+00> : vector<16x256xf32>
    %59 = tpu.matmul %56, %58, %cst_40 {dimension_numbers = #tpu.dot_dimension_numbers<[1], [0], [0], [1], [0, 0, 1, 1], [], []>} : vector<16x128xf32>, vector<128x256xf32>, vector<16x256xf32> -> vector<16x256xf32>
    %c1_41 = arith.constant 1 : index
    %c0_42 = arith.constant 0 : index
    %c0_43 = arith.constant 0 : index
    %60 = vector.load %arg7[%c1_41, %c0_42, %c0_43] : memref<2x1x256xf32, #tpu.memory_space<vmem>>, vector<1x1x256xf32>
    %61 = vector.shape_cast %60 : vector<1x1x256xf32> to vector<1x256xf32>
    %62 = vector.broadcast %61 : vector<1x256xf32> to vector<16x256xf32>
    %63 = arith.addf %59, %62 : vector<16x256xf32>
    %cst_44 = arith.constant 0.000000e+00 : f32
    %64 = vector.broadcast %cst_44 : f32 to vector<16x256xf32>
    %65 = arith.maximumf %63, %64 : vector<16x256xf32>
    %c1_45 = arith.constant 1 : index
    %c0_46 = arith.constant 0 : index
    %c0_47 = arith.constant 0 : index
    %66 = vector.load %arg8[%c1_45, %c0_46, %c0_47] : memref<2x256x128xf32, #tpu.memory_space<vmem>>, vector<1x256x128xf32>
    %67 = vector.shape_cast %66 : vector<1x256x128xf32> to vector<256x128xf32>
    %cst_48 = arith.constant dense<0.000000e+00> : vector<16x128xf32>
    %68 = tpu.matmul %65, %67, %cst_48 {dimension_numbers = #tpu.dot_dimension_numbers<[1], [0], [0], [1], [0, 0, 1, 1], [], []>} : vector<16x256xf32>, vector<256x128xf32>, vector<16x128xf32> -> vector<16x128xf32>
    %c1_49 = arith.constant 1 : index
    %c0_50 = arith.constant 0 : index
    %c0_51 = arith.constant 0 : index
    %69 = vector.load %arg9[%c1_49, %c0_50, %c0_51] : memref<2x1x128xf32, #tpu.memory_space<vmem>>, vector<1x1x128xf32>
    %70 = vector.shape_cast %69 : vector<1x1x128xf32> to vector<1x128xf32>
    %71 = vector.broadcast %70 : vector<1x128xf32> to vector<16x128xf32>
    %72 = arith.addf %68, %71 : vector<16x128xf32>
    %cst_52 = arith.constant 0.000000e+00 : f32
    %73 = vector.broadcast %cst_52 : f32 to vector<16x128xf32>
    %74 = arith.maximumf %72, %73 : vector<16x128xf32>
    %75 = arith.truncf %74 : vector<16x128xf32> to vector<16x128xbf16>
    %cst_53 = arith.constant dense<0.000000e+00> : vector<8x128xf32>
    %76 = tpu.matmul %23, %75, %cst_53 {dimension_numbers = #tpu.dot_dimension_numbers<[1], [0], [0], [1], [0, 0, 1, 1], [], []>} : vector<8x16xbf16>, vector<16x128xbf16>, vector<8x128xf32> -> vector<8x128xf32>
    %c0_54 = arith.constant 0 : index
    %c0_55 = arith.constant 0 : index
    %77 = vector.load %arg1[%c0_54, %c0_55] : memref<8x128xf32, #tpu.memory_space<vmem>>, vector<8x128xf32>
    %c0_56 = arith.constant 0 : index
    %c0_57 = arith.constant 0 : index
    %78 = vector.load %arg10[%c0_56, %c0_57] : memref<1x256xf32, #tpu.memory_space<vmem>>, vector<1x128xf32>
    %c0_58 = arith.constant 0 : index
    %c0_59 = arith.constant 0 : index
    %79 = vector.load %arg11[%c0_58, %c0_59] : memref<1x256xf32, #tpu.memory_space<vmem>>, vector<1x128xf32>
    %cst_60 = arith.constant dense<0.000000e+00> : vector<128xf32>
    %80 = vector.multi_reduction <add>, %77, %cst_60 [0] : vector<8x128xf32> to vector<128xf32>
    %81 = vector.shape_cast %80 : vector<128xf32> to vector<1x128xf32>
    %cst_61 = arith.constant 8.000000e+00 : f32
    %82 = vector.broadcast %cst_61 : f32 to vector<1x128xf32>
    %83 = arith.divf %81, %82 : vector<1x128xf32>
    %84 = vector.broadcast %83 : vector<1x128xf32> to vector<8x128xf32>
    %85 = arith.subf %77, %84 : vector<8x128xf32>
    %86 = arith.mulf %85, %85 : vector<8x128xf32>
    %cst_62 = arith.constant dense<0.000000e+00> : vector<128xf32>
    %87 = vector.multi_reduction <add>, %86, %cst_62 [0] : vector<8x128xf32> to vector<128xf32>
    %88 = vector.shape_cast %87 : vector<128xf32> to vector<1x128xf32>
    %cst_63 = arith.constant 8.000000e+00 : f32
    %89 = vector.broadcast %cst_63 : f32 to vector<1x128xf32>
    %90 = arith.divf %88, %89 : vector<1x128xf32>
    %91 = vector.broadcast %83 : vector<1x128xf32> to vector<8x128xf32>
    %92 = arith.subf %77, %91 : vector<8x128xf32>
    %cst_64 = arith.constant 9.99999974E-6 : f32
    %93 = vector.broadcast %cst_64 : f32 to vector<1x128xf32>
    %94 = arith.addf %90, %93 : vector<1x128xf32>
    %95 = math.rsqrt %94 : vector<1x128xf32>
    %96 = vector.broadcast %95 : vector<1x128xf32> to vector<8x128xf32>
    %97 = arith.mulf %92, %96 : vector<8x128xf32>
    %98 = vector.broadcast %78 : vector<1x128xf32> to vector<8x128xf32>
    %99 = arith.mulf %97, %98 : vector<8x128xf32>
    %100 = vector.broadcast %79 : vector<1x128xf32> to vector<8x128xf32>
    %101 = arith.addf %99, %100 : vector<8x128xf32>
    %c0_65 = arith.constant 0 : index
    %c128 = arith.constant 128 : index
    %102 = vector.load %arg10[%c0_65, %c128] : memref<1x256xf32, #tpu.memory_space<vmem>>, vector<1x128xf32>
    %c0_66 = arith.constant 0 : index
    %c128_67 = arith.constant 128 : index
    %103 = vector.load %arg11[%c0_66, %c128_67] : memref<1x256xf32, #tpu.memory_space<vmem>>, vector<1x128xf32>
    %cst_68 = arith.constant dense<0.000000e+00> : vector<128xf32>
    %104 = vector.multi_reduction <add>, %76, %cst_68 [0] : vector<8x128xf32> to vector<128xf32>
    %105 = vector.shape_cast %104 : vector<128xf32> to vector<1x128xf32>
    %cst_69 = arith.constant 8.000000e+00 : f32
    %106 = vector.broadcast %cst_69 : f32 to vector<1x128xf32>
    %107 = arith.divf %105, %106 : vector<1x128xf32>
    %108 = vector.broadcast %107 : vector<1x128xf32> to vector<8x128xf32>
    %109 = arith.subf %76, %108 : vector<8x128xf32>
    %110 = arith.mulf %109, %109 : vector<8x128xf32>
    %cst_70 = arith.constant dense<0.000000e+00> : vector<128xf32>
    %111 = vector.multi_reduction <add>, %110, %cst_70 [0] : vector<8x128xf32> to vector<128xf32>
    %112 = vector.shape_cast %111 : vector<128xf32> to vector<1x128xf32>
    %cst_71 = arith.constant 8.000000e+00 : f32
    %113 = vector.broadcast %cst_71 : f32 to vector<1x128xf32>
    %114 = arith.divf %112, %113 : vector<1x128xf32>
    %115 = vector.broadcast %107 : vector<1x128xf32> to vector<8x128xf32>
    %116 = arith.subf %76, %115 : vector<8x128xf32>
    %cst_72 = arith.constant 9.99999974E-6 : f32
    %117 = vector.broadcast %cst_72 : f32 to vector<1x128xf32>
    %118 = arith.addf %114, %117 : vector<1x128xf32>
    %119 = math.rsqrt %118 : vector<1x128xf32>
    %120 = vector.broadcast %119 : vector<1x128xf32> to vector<8x128xf32>
    %121 = arith.mulf %116, %120 : vector<8x128xf32>
    %122 = vector.broadcast %102 : vector<1x128xf32> to vector<8x128xf32>
    %123 = arith.mulf %121, %122 : vector<8x128xf32>
    %124 = vector.broadcast %103 : vector<1x128xf32> to vector<8x128xf32>
    %125 = arith.addf %123, %124 : vector<8x128xf32>
    %c0_73 = arith.constant 0 : index
    %c0_74 = arith.constant 0 : index
    %126 = vector.load %arg12[%c0_73, %c0_74] : memref<256x128xf32, #tpu.memory_space<vmem>>, vector<128x128xf32>
    %cst_75 = arith.constant dense<0.000000e+00> : vector<8x128xf32>
    %127 = tpu.matmul %101, %126, %cst_75 {dimension_numbers = #tpu.dot_dimension_numbers<[1], [0], [0], [1], [0, 0, 1, 1], [], []>} : vector<8x128xf32>, vector<128x128xf32>, vector<8x128xf32> -> vector<8x128xf32>
    %c128_76 = arith.constant 128 : index
    %c0_77 = arith.constant 0 : index
    %128 = vector.load %arg12[%c128_76, %c0_77] : memref<256x128xf32, #tpu.memory_space<vmem>>, vector<128x128xf32>
    %cst_78 = arith.constant dense<0.000000e+00> : vector<8x128xf32>
    %129 = tpu.matmul %125, %128, %cst_78 {dimension_numbers = #tpu.dot_dimension_numbers<[1], [0], [0], [1], [0, 0, 1, 1], [], []>} : vector<8x128xf32>, vector<128x128xf32>, vector<8x128xf32> -> vector<8x128xf32>
    %130 = arith.addf %127, %129 : vector<8x128xf32>
    %c0_79 = arith.constant 0 : index
    %c0_80 = arith.constant 0 : index
    %131 = vector.load %arg13[%c0_79, %c0_80] : memref<1x128xf32, #tpu.memory_space<vmem>>, vector<1x128xf32>
    %132 = vector.broadcast %131 : vector<1x128xf32> to vector<8x128xf32>
    %133 = arith.addf %130, %132 : vector<8x128xf32>
    %c0_81 = arith.constant 0 : index
    %c0_82 = arith.constant 0 : index
    %134 = vector.load %arg14[%c0_81, %c0_82] : memref<1x128xf32, #tpu.memory_space<vmem>>, vector<1x128xf32>
    %c0_83 = arith.constant 0 : index
    %c0_84 = arith.constant 0 : index
    %135 = vector.load %arg15[%c0_83, %c0_84] : memref<1x128xf32, #tpu.memory_space<vmem>>, vector<1x128xf32>
    %cst_85 = arith.constant dense<0.000000e+00> : vector<128xf32>
    %136 = vector.multi_reduction <add>, %133, %cst_85 [0] : vector<8x128xf32> to vector<128xf32>
    %137 = vector.shape_cast %136 : vector<128xf32> to vector<1x128xf32>
    %cst_86 = arith.constant 8.000000e+00 : f32
    %138 = vector.broadcast %cst_86 : f32 to vector<1x128xf32>
    %139 = arith.divf %137, %138 : vector<1x128xf32>
    %140 = vector.broadcast %139 : vector<1x128xf32> to vector<8x128xf32>
    %141 = arith.subf %133, %140 : vector<8x128xf32>
    %142 = arith.mulf %141, %141 : vector<8x128xf32>
    %cst_87 = arith.constant dense<0.000000e+00> : vector<128xf32>
    %143 = vector.multi_reduction <add>, %142, %cst_87 [0] : vector<8x128xf32> to vector<128xf32>
    %144 = vector.shape_cast %143 : vector<128xf32> to vector<1x128xf32>
    %cst_88 = arith.constant 8.000000e+00 : f32
    %145 = vector.broadcast %cst_88 : f32 to vector<1x128xf32>
    %146 = arith.divf %144, %145 : vector<1x128xf32>
    %147 = vector.broadcast %139 : vector<1x128xf32> to vector<8x128xf32>
    %148 = arith.subf %133, %147 : vector<8x128xf32>
    %cst_89 = arith.constant 9.99999974E-6 : f32
    %149 = vector.broadcast %cst_89 : f32 to vector<1x128xf32>
    %150 = arith.addf %146, %149 : vector<1x128xf32>
    %151 = math.rsqrt %150 : vector<1x128xf32>
    %152 = vector.broadcast %151 : vector<1x128xf32> to vector<8x128xf32>
    %153 = arith.mulf %148, %152 : vector<8x128xf32>
    %154 = vector.broadcast %134 : vector<1x128xf32> to vector<8x128xf32>
    %155 = arith.mulf %153, %154 : vector<8x128xf32>
    %156 = vector.broadcast %135 : vector<1x128xf32> to vector<8x128xf32>
    %157 = arith.addf %155, %156 : vector<8x128xf32>
    %c0_90 = arith.constant 0 : index
    %c0_91 = arith.constant 0 : index
    %158 = vector.load %arg16[%c0_90, %c0_91] : memref<8x128xf32, #tpu.memory_space<vmem>>, vector<8x128xf32>
    tpu.vector_store %arg16[%c0_90, %c0_91], %157 {strides = array<i32>} : memref<8x128xf32, #tpu.memory_space<vmem>>, vector<8x128xf32>,
    return
  }
}

</mosaic_0001>

<bundles_post_ra>
// kernel: tpu_custom_call.1
= control target key start
LH: loop header
LB: loop body
LE: loop exit
PB: predicated region body
PF: predicated region fallthrough
CT: control target
= control target key end

     0   :  { %s1938_s0 = inlined_call_operand.vmem [shape: f32[16,128], index: 0, kind: input, shape index: {}]   ;;  %s1939_s1 = inlined_call_operand.vmem [shape: f32[8,128], index: 1, kind: input, shape index: {}]   ;;  %s1940_s2 = inlined_call_operand.vmem [shape: s32[40,1], index: 2, kind: input, shape index: {}]   ;;  %s1941_s3 = inlined_call_operand.vmem [shape: s32[1,40], index: 3, kind: input, shape index: {}]   ;;  %s1942_s4 = inlined_call_operand.vmem [shape: s32[1,16], index: 4, kind: input, shape index: {}]   ;;  %s1943_s5 = inlined_call_operand.hbm [shape: f32[2,40,128], index: 5, kind: input, shape index: {}]   ;;  %s1944_s6 = inlined_call_operand.hbm [shape: f32[2,128,256], index: 6, kind: input, shape index: {}]   ;;  %s1945_s7 = inlined_call_operand.vmem [shape: f32[2,1,256], index: 7, kind: input, shape index: {}]   ;;  %s1946_s8 = inlined_call_operand.hbm [shape: f32[2,256,128], index: 8, kind: input, shape index: {}]   ;;  %s1947_s9 = inlined_call_operand.vmem [shape: f32[2,1,128], index: 9, kind: input, shape index: {}]   ;;  %s1948_s10 = inlined_call_operand.vmem [shape: f32[1,256], index: 10, kind: input, shape index: {}]   ;;  %s1949_s11 = inlined_call_operand.vmem [shape: f32[1,256], index: 11, kind: input, shape index: {}]   ;;  %s1950_s12 = inlined_call_operand.hbm [shape: f32[256,128], index: 12, kind: input, shape index: {}]   ;;  %s1951_s13 = inlined_call_operand.vmem [shape: f32[1,128], index: 13, kind: input, shape index: {}]   ;;  %s1952_s14 = inlined_call_operand.vmem [shape: f32[1,128], index: 14, kind: input, shape index: {}]   ;;  %s1953_s15 = inlined_call_operand.vmem [shape: f32[1,128], index: 15, kind: input, shape index: {}]   ;;  %s1954_s16 = inlined_call_operand.hbm [shape: f32[8,128], index: 16, kind: output, shape index: {}]  }
   0x1   :  { %1956 = sst [smem:[#allocation15_spill]] %s1938_s0 }
   0x2   :  { %21 = vsyncpa [#allocation3], 0 }
   0x3   :  { %22 = vsyncpa [#allocation6], 0 }
   0x4   :  { %23 = vsyncpa [#allocation9], 0 }
   0x5   :  { %24 = vsyncpa [#allocation4], 0  ;;  %s1639_s21 = smov [#allocation5]  }
   0x6   :  { %s52_s22 = sshll.u32 %s1639_s21, 4  ;;  %s53_s22 = int_to_ptr.vmem [resolvable:$true] %s52_s22 }
   0x7   :  { %s1539_s23 = scalar_lea.vmem %s53_s22, 8192  ;;  %p1544_p1 = scmp.lt.s32.totalorder %s53_s22, %s53_s22 }
   0x8   :  { %p1540_p0 = scmp.ne.s32.totalorder %s53_s22, %s1539_s23  ;;  %p1545_p2 = scmp.lt.s32.totalorder %s1539_s23, %s1539_s23 }
   0xa   :  { %p1546_p3 = por %p1545_p2, %p1544_p1 }
   0xc   :  { %p1547_p4 = pnand %p1546_p3, %p1540_p0 }
   0xe   :  { %1550 = shalt.err (!%p1547_p4)
}
   0xf   :  { %s1640_s24 = smov 256   ;;  %s1641_s25 = smov 16  }
  0x10   :  { %58 = dma.hbm_to_vmem [thread:$0]  %s1944_s6, 8192, %s53_s22, [#allocation6], %s1640_s24, %s1640_s24, %s1641_s25  }
  0x11   :  { %s1642_s28 = smov [#allocation2]  }
  0x12   :  { %s40_s29 = sshll.u32 %s1642_s28, 4  ;;  %s41_s29 = int_to_ptr.vmem [resolvable:$true] %s40_s29 }
  0x13   :  { %s1559_s30 = scalar_lea.vmem %s41_s29, 1280  ;;  %p1564_p6 = scmp.lt.s32.totalorder %s41_s29, %s41_s29 }
  0x14   :  { %p1560_p5 = scmp.ne.s32.totalorder %s41_s29, %s1559_s30  ;;  %p1565_p7 = scmp.lt.s32.totalorder %s1559_s30, %s1559_s30 }
  0x16   :  { %p1566_p8 = por %p1565_p7, %p1564_p6 }
  0x18   :  { %p1567_p9 = pnand %p1566_p8, %p1560_p5 }
  0x1a   :  { %1570 = shalt.err (!%p1567_p9)
}
  0x1b   :  { %s1643_s0 = smov 128   ;;  %s1644_s17 = smov 8  }
  0x1c   :  { %46 = dma.hbm_to_vmem [thread:$0]  %s1943_s5, 1280, %s41_s29, [#allocation3], %s1643_s0, %s1643_s0, %s1644_s17  }
  0x1d   :  { %s1645_s20 = smov [#allocation7]   ;;  %s1646_s23 = smov [#allocation8]  }
  0x1e   :  { %s66_s21 = sshll.u32 %s1645_s20, 4  ;;  %s84_s6 = sshll.u32 %s1646_s23, 4  ;;  %s67_s21 = int_to_ptr.vmem [resolvable:$true] %s66_s21  ;;  %s85_s6 = int_to_ptr.vmem [resolvable:$true] %s84_s6 }
  0x1f   :  { %s1579_s22 = scalar_lea.vmem %s67_s21, 8192  ;;  %p1584_p11 = scmp.lt.s32.totalorder %s67_s21, %s67_s21 }
  0x20   :  { %p1580_p10 = scmp.ne.s32.totalorder %s67_s21, %s1579_s22  ;;  %p1585_p12 = scmp.lt.s32.totalorder %s1579_s22, %s1579_s22 }
  0x22   :  { %p1586_p13 = por %p1585_p12, %p1584_p11 }
  0x24   :  { %p1587_p0 = pnand %p1586_p13, %p1580_p10 }
  0x26   :  { %1590 = shalt.err (!%p1587_p0)
}
  0x27   :  { %72 = dma.hbm_to_vmem [thread:$0]  %s1946_s8, 8192, %s67_s21, [#allocation6], %s1643_s0, %s1643_s0, %s1644_s17  }
  0x28   :  { %s1599_s26 = scalar_lea.vmem %s85_s6, 4096  ;;  %p1604_p2 = scmp.lt.s32.totalorder %s85_s6, %s85_s6 }
  0x29   :  { %p1600_p1 = scmp.ne.s32.totalorder %s85_s6, %s1599_s26  ;;  %p1605_p3 = scmp.lt.s32.totalorder %s1599_s26, %s1599_s26 }
  0x2b   :  { %p1606_p4 = por %p1605_p3, %p1604_p2 }
  0x2d   :  { %p1607_p5 = pnand %p1606_p4, %p1600_p1 }
  0x2f   :  { %1610 = shalt.err (!%p1607_p5)
}
  0x30   :  { %90 = dma.hbm_to_vmem [thread:$0]  %s1950_s12, 4096, %s85_s6, [#allocation9], %s1643_s0, %s1643_s0, %s1644_s17  }
  0x31   :  { %1631 = dma.done.wait [#allocation3], 1280  }
  0x32   :  { %1632 = vsyncadd [#allocation3], 4294966016 }
  0x33   :  { %1633 = dma.done.wait [#allocation6], 16384  }
  0x34   :  { %1634 = vsyncadd [#allocation6], 4294950912 }
  0x35   :  { %1635 = dma.done.wait [#allocation9], 4096  }
  0x36   :  { %1636 = vsyncadd [#allocation9], 4294963200  ;;  %v1647_v0 = vmov 0   ;;  %v1648_v1 = vmov 0.0   ;;  %v112_v2 = vld [vmem:[%s1940_s2] sm:$0xff]  ;;  %v114_v3 = vld [vmem:[%s1940_s2 + $0x10] sm:$0xff]  ;;  %v110_v10 = vlaneseq }
  0x37   :  { %1523 = vset.pattern.permute.xlu0 %v1647_v0  ;;  %1524 = vset.pattern.permute.xlu1 %v1647_v0  ;;  %s1957_s17 = sld [smem:[#allocation15_spill]]  ;;  %v113_v5 = vld [vmem:[%s1940_s2 + $0x8] sm:$0xff]  ;;  %v115_v6 = vld [vmem:[%s1940_s2 + $0x18] sm:$0xff]  ;;  %vm1649_vm0 = vmmov 0   ;;  %v116_v9 = vld [vmem:[%s1940_s2 + $0x20] sm:$0xff]  ;;  %vm174_vm3 = vcmask 130048  }
  0x38   :  { %1387 = vmatprep.subr.bf16.mxu0 %v1648_v1  ;;  %1401 = vmatprep.subr.bf16.mxu1 %v1648_v1  ;;  %v111_v11 = vand.u32 127, %v110_v10  ;;  %v323_v25 = vld [vmem:[#allocation5 + $0xf8] sm:$0xff]  ;;  %v322_v26 = vld [vmem:[#allocation5 + $0xf0] sm:$0xff]  ;;  %v321_v27 = vld [vmem:[#allocation5 + $0xe8] sm:$0xff]  ;;  %vm247_vm7 = vcmask 1043456   ;;  %vm243_vm10 = vcmask 326656  }
  0x39   :  { %118 = vperm.xlu0 %1523, %v112_v2   ;;  %124 = vperm.xlu1 %1524, %v114_v3   ;;  %v320_v28 = vld [vmem:[#allocation5 + $0xe0] sm:$0xff]  ;;  %v319_v29 = vld [vmem:[#allocation5 + $0xd8] sm:$0xff]  ;;  %v318_v30 = vld [vmem:[#allocation5 + $0xd0] sm:$0xff]  ;;  %v1799_v2 = vshrl.u32 %v110_v10, 7  ;;  %s1650_s2 = smov [#allocation10]  }
  0x3a   :  { %1389 = vmatprep.mubr.msk.bf16.mxu0 %vm1649_vm0, %v1648_v1  ;;  %1407 = vmatprep.mubr.msk.bf16.mxu1 %vm1649_vm0, %v1648_v1  ;;  %v317_v31 = vld [vmem:[#allocation5 + $0xc8] sm:$0xff]  ;;  %v316_v32 = vld [vmem:[#allocation5 + $0xc0] sm:$0xff]  ;;  %v315_v33 = vld [vmem:[#allocation5 + $0xb8] sm:$0xff]  ;;  %s1226_s25 = sshll.u32 %s1650_s2, 4  ;;  %s1227_s25 = int_to_ptr.vmem [resolvable:$true] %s1226_s25 }
  0x3b   :  { %v314_v34 = vld [vmem:[#allocation5 + $0xb0] sm:$0xff]  ;;  %v313_v35 = vld [vmem:[#allocation5 + $0xa8] sm:$0xff]  ;;  %v312_v36 = vld [vmem:[#allocation5 + $0xa0] sm:$0xff]  ;;  %p1616_p7 = scmp.lt.s32.totalorder %s1227_s25, %s1227_s25 }
  0x3c   :  { %v311_v37 = vld [vmem:[#allocation5 + $0x98] sm:$0xff]  ;;  %v310_v38 = vld [vmem:[#allocation5 + $0x90] sm:$0xff]  ;;  %v309_v39 = vld [vmem:[#allocation5 + $0x88] sm:$0xff] }
  0x3d   :  { %v166_v4 = vld [vmem:[%s1957_s17] sm:$0xff]  ;;  %v167_v7 = vld [vmem:[%s1957_s17 + $0x8] sm:$0xff]  ;;  %121 = vperm.xlu0 %1523, %v113_v5   ;;  %127 = vperm.xlu1 %1524, %v115_v6   ;;  %v308_v40 = vld [vmem:[#allocation5 + $0x80] sm:$0xff] }
  0x3e   :  { %v168_v8 = vpack.c.bf16 %v167_v7, %v166_v4  ;;  %v307_v41 = vld [vmem:[#allocation5 + $0x78] sm:$0xff]  ;;  %v306_v42 = vld [vmem:[#allocation5 + $0x70] sm:$0xff]  ;;  %v305_v43 = vld [vmem:[#allocation5 + $0x68] sm:$0xff] }
  0x3f   :  { %v304_v44 = vld [vmem:[#allocation5 + $0x60] sm:$0xff]  ;;  %v303_v45 = vld [vmem:[#allocation5 + $0x58] sm:$0xff]  ;;  %v302_v46 = vld [vmem:[#allocation5 + $0x50] sm:$0xff] }
  0x40   :  { %1388 = vmatpush3.bf16.msra.mxu0 %v168_v8  ;;  %v301_v47 = vld [vmem:[#allocation5 + $0x48] sm:$0xff]  ;;  %v300_v48 = vld [vmem:[#allocation5 + $0x40] sm:$0xff]  ;;  %v299_v49 = vld [vmem:[#allocation5 + $0x38] sm:$0xff] }
  0x41   :  { %130 = vperm.xlu0 %1523, %v116_v9   ;;  %336 = vmatprep.subr.mxu0 %v323_v25  ;;  %v298_v50 = vld [vmem:[#allocation5 + $0x30] sm:$0xff]  ;;  %v297_v51 = vld [vmem:[#allocation5 + $0x28] sm:$0xff]  ;;  %v296_v52 = vld [vmem:[#allocation5 + $0x20] sm:$0xff]  ;;  %v147_v9 = vadd.s32 8, %v1799_v2 }
  0x42   :  { %v295_v53 = vld [vmem:[#allocation5 + $0x18] sm:$0xff]  ;;  %v294_v54 = vld [vmem:[#allocation5 + $0x10] sm:$0xff]  ;;  %v293_v55 = vld [vmem:[#allocation5 + $0x8] sm:$0xff] }
  0x43   :  { %v173_v0 = vld [vmem:[#allocation2 + $0x20] sm:$0xff]  ;;  %v172_v4 = vld [vmem:[#allocation2 + $0x18] sm:$0xff]  ;;  %v171_v7 = vld [vmem:[#allocation2 + $0x10] sm:$0xff] }
  0xb4   :  { %v119_v12 = vpop.permute.xlu0 %118  ;;  %v125_v13 = vpop.permute.xlu1 %124 }
  0xb5   :  { %vm132_vm1 = vcmp.eq.s32.totalorder %v111_v11, %v119_v12  ;;  %vm134_vm4 = vcmp.eq.s32.totalorder %v111_v11, %v125_v13  ;;  %v1237_v13 = vld [vmem:[%s1941_s3] ss:$0 sm:$0xff]  ;;  %s1611_s3 = scalar_lea.vmem %s1227_s25, 128 }
  0xb6   :  { %v137_v15 = vsel %vm132_vm1, 1.0, %v1648_v1  ;;  %v139_v19 = vsel %vm134_vm4, 1.0, %v1648_v1  ;;  %vm153_vm8 = vcmp.eq.s32.totalorder %v1799_v2, %v1237_v13  ;;  %vm154_vm9 = vcmp.eq.s32.totalorder %v147_v9, %v1237_v13  ;;  %p1612_p6 = scmp.ne.s32.totalorder %s1227_s25, %s1611_s3  ;;  %p1617_p8 = scmp.lt.s32.totalorder %s1611_s3, %s1611_s3 }
  0xb7   :  { %v156_v25 = vsel %vm154_vm9, 1.0, %v1648_v1 }
  0xb8   :  { %v122_v14 = vpop.permute.xlu0 %121  ;;  %v128_v17 = vpop.permute.xlu1 %127  ;;  %p1618_p9 = por %p1617_p8, %p1616_p7 }
  0xb9   :  { %vm133_vm2 = vcmp.eq.s32.totalorder %v111_v11, %v122_v14  ;;  %vm135_vm5 = vcmp.eq.s32.totalorder %v111_v11, %v128_v17  ;;  %v170_v14 = vld [vmem:[#allocation2 + $0x8] sm:$0xff]  ;;  %v169_v17 = vld [vmem:[#allocation2] sm:$0xff] }
  0xba   :  { %v138_v16 = vsel %vm133_vm2, 1.0, %v1648_v1  ;;  %v140_v20 = vsel %vm135_vm5, 1.0, %v1648_v1  ;;  %p1619_p10 = pnand %p1618_p9, %p1612_p6 }
  0xbb   :  { %v1778_v18 = vpack.c.bf16 %v138_v16, %v137_v15  ;;  %v1786_v22 = vpack.c.bf16 %v140_v20, %v139_v19 }
  0xbc   :  { %v131_v21 = vpop.permute.xlu0 %130 }
  0xbd   :  { %1390 = vmatmul.mubr.msk.bf16.vlgmr.msra.gmra.mxu0 %vm174_vm3, %v1778_v18  ;;  %vm136_vm6 = vcmp.eq.s32.totalorder %v111_v11, %v131_v21 }
  0xbe   :  { %1393 = vmatprep.mubr.msk.bf16.mxu0 %vm1649_vm0, %v1648_v1  ;;  %v141_v23 = vsel %vm136_vm6, 1.0, %v1648_v1  ;;  %337 = vmatpush1.msra.mxu0 %v322_v26 }
  0xbf   :  { %v1793_v24 = vpack.c.bf16 %v141_v23, %v141_v23  ;;  %338 = vmatprep.subr.mxu0 %v321_v27  ;;  %v155_v23 = vsel %vm153_vm8, 1.0, %v1648_v1 }
  0xc0   :  { %339 = vmatpush1.msra.mxu0 %v320_v28  ;;  %v1811_v27 = vpack.c.bf16 %v156_v25, %v155_v23  ;;  %v292_v28 = vld [vmem:[#allocation5] sm:$0xff] }
  0xc1   :  { %340 = vmatprep.subr.mxu0 %v319_v29  ;;  %v448_v29 = vld [vmem:[#allocation7 + $0xf8] sm:$0xff] }
  0xc2   :  { %341 = vmatpush1.msra.mxu0 %v318_v30  ;;  %v432_v30 = vld [vmem:[#allocation7 + $0x78] sm:$0xff] }
  0xc3   :  { %342 = vmatprep.subr.mxu0 %v317_v31  ;;  %v447_v31 = vld [vmem:[#allocation7 + $0xf0] sm:$0xff] }
  0xc4   :  { %343 = vmatpush1.msra.mxu0 %v316_v32  ;;  %v431_v32 = vld [vmem:[#allocation7 + $0x70] sm:$0xff] }
  0xc5   :  { %1394 = vmatmul.mubr.msk.bf16.gmra.mxu0 %vm174_vm3, %v1786_v22  ;;  %344 = vmatprep.subr.mxu0 %v315_v33  ;;  %v446_v33 = vld [vmem:[#allocation7 + $0xe8] sm:$0xff] }
  0xc6   :  { %1397 = vmatprep.mubr.msk.bf16.mxu0 %vm1649_vm0, %v1648_v1  ;;  %345 = vmatpush1.msra.mxu0 %v314_v34  ;;  %v430_v34 = vld [vmem:[#allocation7 + $0x68] sm:$0xff] }
  0xc7   :  { %346 = vmatprep.subr.mxu0 %v313_v35  ;;  %v445_v35 = vld [vmem:[#allocation7 + $0xe0] sm:$0xff] }
  0xc8   :  { %347 = vmatpush1.msra.mxu0 %v312_v36  ;;  %v429_v36 = vld [vmem:[#allocation7 + $0x60] sm:$0xff] }
  0xc9   :  { %348 = vmatprep.subr.mxu0 %v311_v37  ;;  %v444_v37 = vld [vmem:[#allocation7 + $0xd8] sm:$0xff] }
  0xca   :  { %349 = vmatpush1.msra.mxu0 %v310_v38  ;;  %v428_v38 = vld [vmem:[#allocation7 + $0x58] sm:$0xff] }
  0xcb   :  { %350 = vmatprep.subr.mxu0 %v309_v39  ;;  %v443_v39 = vld [vmem:[#allocation7 + $0xd0] sm:$0xff] }
  0xcc   :  { %351 = vmatpush1.msra.mxu0 %v308_v40  ;;  %v427_v40 = vld [vmem:[#allocation7 + $0x50] sm:$0xff] }
  0xcd   :  { %1398 = vmatmul.mubr.msk.bf16.gmra.mxu0 %vm174_vm3, %v1793_v24  ;;  %352 = vmatprep.subr.mxu0 %v307_v41  ;;  %v442_v41 = vld [vmem:[#allocation7 + $0xc8] sm:$0xff] }
  0xce   :  { %400 = vmatprep.mubr.f32.mxu0 %v1648_v1  ;;  %353 = vmatpush1.msra.mxu0 %v306_v42  ;;  %v426_v42 = vld [vmem:[#allocation7 + $0x48] sm:$0xff] }
  0xcf   :  { %354 = vmatprep.subr.mxu0 %v305_v43  ;;  %v441_v43 = vld [vmem:[#allocation7 + $0xc0] sm:$0xff] }
  0xd0   :  { %355 = vmatpush1.msra.mxu0 %v304_v44  ;;  %v425_v44 = vld [vmem:[#allocation7 + $0x40] sm:$0xff] }
  0xd1   :  { %356 = vmatprep.subr.mxu0 %v303_v45  ;;  %v440_v45 = vld [vmem:[#allocation7 + $0xb8] sm:$0xff] }
  0xd2   :  { %357 = vmatpush1.msra.mxu0 %v302_v46  ;;  %v424_v46 = vld [vmem:[#allocation7 + $0x38] sm:$0xff] }
  0xd3   :  { %358 = vmatprep.subr.mxu0 %v301_v47  ;;  %v439_v47 = vld [vmem:[#allocation7 + $0xb0] sm:$0xff] }
  0xd4   :  { %359 = vmatpush1.msra.mxu0 %v300_v48  ;;  %v423_v48 = vld [vmem:[#allocation7 + $0x30] sm:$0xff] }
  0xd5   :  { %360 = vmatprep.subr.mxu0 %v299_v49  ;;  %v438_v49 = vld [vmem:[#allocation7 + $0xa8] sm:$0xff] }
  0xd6   :  { %361 = vmatpush1.msra.mxu0 %v298_v50  ;;  %v422_v50 = vld [vmem:[#allocation7 + $0x28] sm:$0xff] }
  0xd7   :  { %362 = vmatprep.subr.mxu0 %v297_v51  ;;  %v437_v51 = vld [vmem:[#allocation7 + $0xa0] sm:$0xff] }
  0xd8   :  { %363 = vmatpush1.msra.mxu0 %v296_v52  ;;  %v421_v52 = vld [vmem:[#allocation7 + $0x20] sm:$0xff] }
  0xd9   :  { %364 = vmatprep.subr.mxu0 %v295_v53 }
  0xda   :  { %365 = vmatpush1.msra.mxu0 %v294_v54 }
  0xdb   :  { %366 = vmatprep.subr.mxu0 %v293_v55 }
  0xdc   :  { %367 = vmatpush1.msra.mxu0 %v292_v28 }
  0xdd   :  { %1411 = vmatprep.subr.bf16.mxu0 %v1648_v1 }
 0x17d   :  { %v218_v56 = vpop.f32.mrf.mxu0 }
 0x17e   :  { %v219_v21 = vadd.f32 %v218_v56, %v169_v17 }
 0x17f   :  { %v1391_v57 = vpop.f32.mrf.mxu0 }
 0x180   :  { %v436_v57 = vld [vmem:[#allocation7 + $0x98] sm:$0xff] }
 0x181   :  { %v221_v58 = vpop.f32.mrf.mxu0 }
 0x182   :  { %v222_v19 = vadd.f32 %v221_v58, %v170_v14  ;;  %v420_v58 = vld [vmem:[#allocation7 + $0x18] sm:$0xff] }
 0x183   :  { %v1392_v59 = vpop.f32.mrf.mxu0 }
 0x184   :  { %v240_v26 = vpack.c.bf16 %v222_v19, %v219_v21  ;;  %v435_v59 = vld [vmem:[#allocation7 + $0x90] sm:$0xff] }
 0x185   :  { %v226_v60 = vpop.f32.mrf.mxu0 }
 0x186   :  { %v227_v10 = vadd.f32 %v226_v60, %v171_v7  ;;  %v419_v60 = vld [vmem:[#allocation7 + $0x10] sm:$0xff] }
 0x187   :  { %v1395_v61 = vpop.f32.mrf.mxu0 }
 0x188   :  { %v434_v61 = vld [vmem:[#allocation7 + $0x88] sm:$0xff] }
 0x189   :  { %v229_v62 = vpop.f32.mrf.mxu0 }
 0x18a   :  { %v230_v11 = vadd.f32 %v229_v62, %v172_v4  ;;  %v418_v62 = vld [vmem:[#allocation7 + $0x8] sm:$0xff]  ;;  %v324_v4 = vld [vmem:[%s1945_s7] sm:$0x3] }
 0x18b   :  { %v1396_v63 = vpop.f32.mrf.mxu0 }
 0x18c   :  { %v241_v20 = vpack.c.bf16 %v230_v11, %v227_v10  ;;  %v433_v63 = vld [vmem:[#allocation7 + $0x80] sm:$0xff] }
 0x18d   :  { %v234_v3 = vpop.f32.mrf.mxu0 }
 0x18e   :  { %v235_v5 = vadd.f32 %v234_v3, %v173_v0  ;;  %v417_v0 = vld [vmem:[#allocation7] sm:$0xff]  ;;  %v328_v3 = vsub.s32 0, %v1799_v2 }
 0x18f   :  { %v1399_v6 = vpop.f32.mrf.mxu0 }
 0x190   :  { %v242_v8 = vpack.c.bf16 %v235_v5, %v235_v5  ;;  %v332_v5 = vsub.s32 1, %v1799_v2  ;;  %v329_v6 = vrot.slane %v324_v4, %v328_v3 }
 0x191   :  { %v237_v12 = vpop.f32.mrf.mxu0 }
 0x192   :  { %v249_v15 = vsel %vm247_vm7, %v242_v8, 0  ;;  %v333_v7 = vrot.slane %v324_v4, %v332_v5 }
 0x193   :  { %v1400_v16 = vpop.f32.mrf.mxu0  ;;  %1402 = vmatpush3.bf16.msra.mxu1 %v249_v15 }
 0x194   :  { %1403 = vmatprep.subr.bf16.mxu1 %v1648_v1 }
 0x197   :  { %1404 = vmatpush3.bf16.msra.mxu1 %v241_v20 }
 0x198   :  { %1405 = vmatprep.subr.bf16.mxu1 %v1648_v1 }
 0x19b   :  { %1406 = vmatpush3.bf16.msra.mxu1 %v240_v26  ;;  %v1243_v26 = vld [vmem:[%s1947_s9] ss:$0 sm:$0xff] }
 0x19c   :  { %1267 = vmatprep.subr.mxu1 %v448_v29 }
 0x19e   :  { %1408 = vmatmul.mubr.msk.bf16.vlgmr.msra.gmra.mxu1 %vm243_vm10, %v1811_v27 }
 0x19f   :  { %1268 = vmatpush3.msra.mxu1 %v432_v30 }
 0x1a0   :  { %1269 = vmatprep.subr.mxu1 %v447_v31 }
 0x1a1   :  { %1270 = vmatpush3.msra.mxu1 %v431_v32 }
 0x1a2   :  { %1271 = vmatprep.subr.mxu1 %v446_v33 }
 0x1a3   :  { %1272 = vmatpush3.msra.mxu1 %v430_v34 }
 0x1a4   :  { %1273 = vmatprep.subr.mxu1 %v445_v35 }
 0x1a5   :  { %1274 = vmatpush3.msra.mxu1 %v429_v36  ;;  %v675_v36 = vld [vmem:[#allocation5 + $0x1f8] sm:$0xff] }
 0x1a6   :  { %1275 = vmatprep.subr.mxu1 %v444_v37  ;;  %v674_v37 = vld [vmem:[#allocation5 + $0x1f0] sm:$0xff] }
 0x1a7   :  { %1276 = vmatpush3.msra.mxu1 %v428_v38  ;;  %v673_v38 = vld [vmem:[#allocation5 + $0x1e8] sm:$0xff] }
 0x1a8   :  { %1277 = vmatprep.subr.mxu1 %v443_v39  ;;  %v672_v39 = vld [vmem:[#allocation5 + $0x1e0] sm:$0xff] }
 0x1a9   :  { %1278 = vmatpush3.msra.mxu1 %v427_v40  ;;  %v670_v40 = vld [vmem:[#allocation5 + $0x1d0] sm:$0xff] }
 0x1aa   :  { %1279 = vmatprep.subr.mxu1 %v442_v41  ;;  %v669_v41 = vld [vmem:[#allocation5 + $0x1c8] sm:$0xff] }
 0x1ab   :  { %1280 = vmatpush3.msra.mxu1 %v426_v42  ;;  %v667_v42 = vld [vmem:[#allocation5 + $0x1b8] sm:$0xff] }
 0x1ac   :  { %1281 = vmatprep.subr.mxu1 %v441_v43  ;;  %v666_v43 = vld [vmem:[#allocation5 + $0x1b0] sm:$0xff] }
 0x1ad   :  { %1282 = vmatpush3.msra.mxu1 %v425_v44  ;;  %v664_v44 = vld [vmem:[#allocation5 + $0x1a0] sm:$0xff] }
 0x1ae   :  { %1283 = vmatprep.subr.mxu1 %v440_v45  ;;  %v663_v45 = vld [vmem:[#allocation5 + $0x198] sm:$0xff] }
 0x1af   :  { %1284 = vmatpush3.msra.mxu1 %v424_v46  ;;  %v662_v46 = vld [vmem:[#allocation5 + $0x190] sm:$0xff] }
 0x1b0   :  { %1285 = vmatprep.subr.mxu1 %v439_v47  ;;  %v661_v47 = vld [vmem:[#allocation5 + $0x188] sm:$0xff] }
 0x1b1   :  { %1286 = vmatpush3.msra.mxu1 %v423_v48  ;;  %v660_v48 = vld [vmem:[#allocation5 + $0x180] sm:$0xff] }
 0x1b2   :  { %1287 = vmatprep.subr.mxu1 %v438_v49  ;;  %v659_v49 = vld [vmem:[#allocation5 + $0x178] sm:$0xff] }
 0x1b3   :  { %1288 = vmatpush3.msra.mxu1 %v422_v50  ;;  %v658_v50 = vld [vmem:[#allocation5 + $0x170] sm:$0xff] }
 0x1b4   :  { %1289 = vmatprep.subr.mxu1 %v437_v51  ;;  %v657_v51 = vld [vmem:[#allocation5 + $0x168] sm:$0xff] }
 0x1b5   :  { %1290 = vmatpush3.msra.mxu1 %v421_v52  ;;  %v656_v52 = vld [vmem:[#allocation5 + $0x160] sm:$0xff] }
 0x1b6   :  { %1291 = vmatprep.subr.mxu1 %v436_v57  ;;  %v651_v57 = vld [vmem:[#allocation5 + $0x138] sm:$0xff] }
 0x1b7   :  { %1292 = vmatpush3.msra.mxu1 %v420_v58  ;;  %v650_v58 = vld [vmem:[#allocation5 + $0x130] sm:$0xff] }
 0x1b8   :  { %1293 = vmatprep.subr.mxu1 %v435_v59  ;;  %v649_v59 = vld [vmem:[#allocation5 + $0x128] sm:$0xff] }
 0x1b9   :  { %1294 = vmatpush3.msra.mxu1 %v419_v60  ;;  %v648_v60 = vld [vmem:[#allocation5 + $0x120] sm:$0xff] }
 0x1ba   :  { %1295 = vmatprep.subr.mxu1 %v434_v61  ;;  %v647_v61 = vld [vmem:[#allocation5 + $0x118] sm:$0xff] }
 0x1bb   :  { %1296 = vmatpush3.msra.mxu1 %v418_v62  ;;  %v646_v62 = vld [vmem:[#allocation5 + $0x110] sm:$0xff] }
 0x1bc   :  { %1297 = vmatprep.subr.mxu1 %v433_v63  ;;  %v645_v63 = vld [vmem:[#allocation5 + $0x108] sm:$0xff] }
 0x1bd   :  { %1298 = vmatpush3.msra.mxu1 %v417_v0 }
 0x1be   :  { %1425 = vmatprep.subr.bf16.mxu1 %v1648_v1 }
 0x25e   :  { %v285_v53 = vpop.f32.mrf.mxu1 }
 0x25f   :  { %401 = vmatmul.mubr.f32.vlgmr.msra.gmra.mxu0 %v285_v53  ;;  %v655_v53 = vld [vmem:[#allocation5 + $0x158] sm:$0xff] }
 0x260   :  { %v1409_v54 = vpop.f32.mrf.mxu1  ;;  %406 = vmatprep.mubr.f32.mxu0 %v1648_v1 }
 0x261   :  { %v654_v54 = vld [vmem:[#allocation5 + $0x150] sm:$0xff] }
 0x262   :  { %v288_v55 = vpop.f32.mrf.mxu1 }
 0x263   :  { %407 = vmatmul.mubr.f32.gmra.mxu0 %v288_v55  ;;  %v653_v55 = vld [vmem:[#allocation5 + $0x148] sm:$0xff] }
 0x264   :  { %v1410_v56 = vpop.f32.mrf.mxu1  ;;  %1413 = vmatprep.mubr.msk.bf16.mxu0 %vm1649_vm0, %v1648_v1 }
 0x265   :  { %v652_v56 = vld [vmem:[#allocation5 + $0x140] sm:$0xff] }
 0x31f   :  { %v402_v8 = vpop.f32.mrf.mxu0 }
 0x320   :  { %v403_v9 = vadd.f32 %v402_v8, %v329_v6 }
 0x321   :  { %v404_v11 = vpop.f32.mrf.mxu0 }
 0x322   :  { %v405_v12 = vadd.f32 %v404_v11, %v333_v7  ;;  %v413_v15 = vmax.f32 %v403_v9, 0.0 }
 0x323   :  { %v408_v13 = vpop.f32.mrf.mxu0 }
 0x324   :  { %v414_v14 = vmax.f32 %v405_v12, 0.0  ;;  %v409_v10 = vadd.f32 %v408_v13, %v329_v6  ;;  %v539_v13 = vld [vmem:[#allocation2 + $0x48] sm:$0xff] }
 0x325   :  { %v410_v16 = vpop.f32.mrf.mxu0 }
 0x326   :  { %v411_v17 = vadd.f32 %v410_v16, %v333_v7  ;;  %520 = vmatprep.mubr.f32.mxu1 %v414_v14  ;;  %v415_v20 = vmax.f32 %v409_v10, 0.0 }
 0x327   :  { %521 = vmatmul.mubr.f32.vlgmr.msra.gmra.mxu1 %v413_v15  ;;  %v538_v15 = vld [vmem:[#allocation2 + $0x40] sm:$0xff] }
 0x328   :  { %v416_v19 = vmax.f32 %v411_v17, 0.0  ;;  %v537_v17 = vld [vmem:[#allocation2 + $0x38] sm:$0xff] }
 0x32a   :  { %525 = vmatprep.mubr.f32.mxu1 %v416_v19 }
 0x32b   :  { %526 = vmatmul.mubr.f32.gmra.mxu1 %v415_v20 }
 0x32c   :  { %1431 = vmatprep.mubr.msk.bf16.mxu1 %vm1649_vm0, %v1648_v1 }
 0x3e7   :  { %v1299_v21 = vpop.f32.mrf.mxu1 }
 0x3e9   :  { %v1300_v23 = vpop.f32.mrf.mxu1 }
 0x3ea   :  { %v1301_v25 = vadd.f32 %v1300_v23, %v1299_v21  ;;  %v536_v23 = vld [vmem:[#allocation2 + $0x30] sm:$0xff] }
 0x3eb   :  { %v1302_v28 = vpop.f32.mrf.mxu1 }
 0x3ec   :  { %v523_v30 = vadd.f32 %v1301_v25, %v1243_v26 }
 0x3ed   :  { %v1303_v29 = vpop.f32.mrf.mxu1 }
 0x3ee   :  { %v1304_v31 = vadd.f32 %v1303_v29, %v1302_v28  ;;  %v531_v33 = vmax.f32 %v523_v30, 0.0  ;;  %v535_v29 = vld [vmem:[#allocation2 + $0x28] sm:$0xff] }
 0x3f0   :  { %v528_v32 = vadd.f32 %v1304_v31, %v1243_v26 }
 0x3f2   :  { %v532_v34 = vmax.f32 %v528_v32, 0.0 }
 0x3f4   :  { %v533_v35 = vpack.c.bf16 %v532_v34, %v531_v33  ;;  %v644_v34 = vld [vmem:[#allocation5 + $0x100] sm:$0xff] }
 0x3f6   :  { %1412 = vmatpush3.bf16.msra.mxu0 %v533_v35  ;;  %v802_v35 = vld [vmem:[#allocation7 + $0x1f8] sm:$0xff] }
 0x3f7   :  { %689 = vmatprep.subr.mxu0 %v675_v36  ;;  %v786_v36 = vld [vmem:[#allocation7 + $0x178] sm:$0xff] }
 0x3f9   :  { %1414 = vmatmul.mubr.msk.bf16.vlgmr.msra.gmra.mxu0 %vm174_vm3, %v1778_v18  ;;  %v671_v18 = vld [vmem:[#allocation5 + $0x1d8] sm:$0xff] }
 0x3fa   :  { %1417 = vmatprep.mubr.msk.bf16.mxu0 %vm1649_vm0, %v1648_v1  ;;  %690 = vmatpush1.msra.mxu0 %v674_v37  ;;  %v801_v37 = vld [vmem:[#allocation7 + $0x1f0] sm:$0xff] }
 0x3fb   :  { %691 = vmatprep.subr.mxu0 %v673_v38  ;;  %v785_v38 = vld [vmem:[#allocation7 + $0x170] sm:$0xff] }
 0x3fc   :  { %692 = vmatpush1.msra.mxu0 %v672_v39  ;;  %v800_v39 = vld [vmem:[#allocation7 + $0x1e8] sm:$0xff] }
 0x3fd   :  { %693 = vmatprep.subr.mxu0 %v671_v18  ;;  %v784_v18 = vld [vmem:[#allocation7 + $0x168] sm:$0xff] }
 0x3fe   :  { %694 = vmatpush1.msra.mxu0 %v670_v40  ;;  %v799_v40 = vld [vmem:[#allocation7 + $0x1e0] sm:$0xff] }
 0x3ff   :  { %695 = vmatprep.subr.mxu0 %v669_v41  ;;  %v783_v41 = vld [vmem:[#allocation7 + $0x160] sm:$0xff] }
 0x401   :  { %1418 = vmatmul.mubr.msk.bf16.gmra.mxu0 %vm174_vm3, %v1786_v22  ;;  %v668_v22 = vld [vmem:[#allocation5 + $0x1c0] sm:$0xff] }
 0x402   :  { %1421 = vmatprep.mubr.msk.bf16.mxu0 %vm1649_vm0, %v1648_v1  ;;  %696 = vmatpush1.msra.mxu0 %v668_v22  ;;  %v798_v22 = vld [vmem:[#allocation7 + $0x1d8] sm:$0xff] }
 0x403   :  { %697 = vmatprep.subr.mxu0 %v667_v42  ;;  %v797_v42 = vld [vmem:[#allocation7 + $0x1d0] sm:$0xff] }
 0x404   :  { %698 = vmatpush1.msra.mxu0 %v666_v43  ;;  %v781_v43 = vld [vmem:[#allocation7 + $0x150] sm:$0xff] }
 0x409   :  { %1422 = vmatmul.mubr.msk.bf16.gmra.mxu0 %vm174_vm3, %v1793_v24  ;;  %v665_v24 = vld [vmem:[#allocation5 + $0x1a8] sm:$0xff] }
 0x40a   :  { %753 = vmatprep.mubr.f32.mxu0 %v1648_v1  ;;  %699 = vmatprep.subr.mxu0 %v665_v24  ;;  %v796_v24 = vld [vmem:[#allocation7 + $0x1c8] sm:$0xff] }
 0x40b   :  { %700 = vmatpush1.msra.mxu0 %v664_v44  ;;  %v780_v44 = vld [vmem:[#allocation7 + $0x148] sm:$0xff] }
 0x40c   :  { %701 = vmatprep.subr.mxu0 %v663_v45  ;;  %v795_v45 = vld [vmem:[#allocation7 + $0x1c0] sm:$0xff] }
 0x40d   :  { %702 = vmatpush1.msra.mxu0 %v662_v46  ;;  %v779_v46 = vld [vmem:[#allocation7 + $0x140] sm:$0xff] }
 0x40e   :  { %703 = vmatprep.subr.mxu0 %v661_v47  ;;  %v794_v47 = vld [vmem:[#allocation7 + $0x1b8] sm:$0xff] }
 0x40f   :  { %704 = vmatpush1.msra.mxu0 %v660_v48  ;;  %v778_v48 = vld [vmem:[#allocation7 + $0x138] sm:$0xff] }
 0x410   :  { %705 = vmatprep.subr.mxu0 %v659_v49  ;;  %v793_v49 = vld [vmem:[#allocation7 + $0x1b0] sm:$0xff] }
 0x411   :  { %706 = vmatpush1.msra.mxu0 %v658_v50  ;;  %v777_v50 = vld [vmem:[#allocation7 + $0x130] sm:$0xff] }
 0x412   :  { %707 = vmatprep.subr.mxu0 %v657_v51  ;;  %v792_v51 = vld [vmem:[#allocation7 + $0x1a8] sm:$0xff] }
 0x413   :  { %708 = vmatpush1.msra.mxu0 %v656_v52  ;;  %v776_v52 = vld [vmem:[#allocation7 + $0x128] sm:$0xff] }
 0x414   :  { %709 = vmatprep.subr.mxu0 %v655_v53  ;;  %v791_v53 = vld [vmem:[#allocation7 + $0x1a0] sm:$0xff] }
 0x415   :  { %710 = vmatpush1.msra.mxu0 %v654_v54  ;;  %v775_v54 = vld [vmem:[#allocation7 + $0x120] sm:$0xff] }
 0x416   :  { %711 = vmatprep.subr.mxu0 %v653_v55 }
 0x417   :  { %712 = vmatpush1.msra.mxu0 %v652_v56 }
 0x418   :  { %713 = vmatprep.subr.mxu0 %v651_v57 }
 0x419   :  { %714 = vmatpush1.msra.mxu0 %v650_v58 }
 0x41a   :  { %715 = vmatprep.subr.mxu0 %v649_v59  ;;  %v790_v59 = vld [vmem:[#allocation7 + $0x198] sm:$0xff] }
 0x41b   :  { %716 = vmatpush1.msra.mxu0 %v648_v60  ;;  %v774_v60 = vld [vmem:[#allocation7 + $0x118] sm:$0xff] }
 0x41c   :  { %717 = vmatprep.subr.mxu0 %v647_v61  ;;  %v789_v61 = vld [vmem:[#allocation7 + $0x190] sm:$0xff] }
 0x41d   :  { %718 = vmatpush1.msra.mxu0 %v646_v62  ;;  %v773_v62 = vld [vmem:[#allocation7 + $0x110] sm:$0xff] }
 0x41e   :  { %719 = vmatprep.subr.mxu0 %v645_v63  ;;  %v788_v63 = vld [vmem:[#allocation7 + $0x188] sm:$0xff] }
 0x41f   :  { %720 = vmatpush1.msra.mxu0 %v644_v34 }
 0x420   :  { %1435 = vmatprep.subr.bf16.mxu0 %v1648_v1 }
 0x4b9   :  { %v574_v0 = vpop.f32.mrf.mxu0 }
 0x4ba   :  { %v575_v32 = vadd.f32 %v574_v0, %v535_v29  ;;  %v772_v0 = vld [vmem:[#allocation7 + $0x108] sm:$0xff]  ;;  %v1238_v29 = vld [vmem:[%s1942_s4] ss:$0 sm:$0xff] }
 0x4bb   :  { %v1415_v4 = vpop.f32.mrf.mxu0  ;;  %vm163_vm11 = vcmp.eq.s32.totalorder %v1799_v2, %v1238_v29  ;;  %v1020_v29 = vld [vmem:[#allocation8 + $0x80] sm:$0xff] }
 0x4bc   :  { %v787_v4 = vld [vmem:[#allocation7 + $0x180] sm:$0xff] }
 0x4bd   :  { %v577_v6 = vpop.f32.mrf.mxu0 }
 0x4be   :  { %v578_v30 = vadd.f32 %v577_v6, %v536_v23  ;;  %v771_v6 = vld [vmem:[#allocation7 + $0x100] sm:$0xff] }
 0x4bf   :  { %v1416_v7 = vpop.f32.mrf.mxu0 }
 0x4c0   :  { %v596_v33 = vpack.c.bf16 %v578_v30, %v575_v32  ;;  %v1248_v7 = vld [vmem:[%s1945_s7 + $0x2] sm:$0x3] }
 0x4c1   :  { %v582_v8 = vpop.f32.mrf.mxu0 }
 0x4c2   :  { %v583_v26 = vadd.f32 %v582_v8, %v537_v17  ;;  %v682_v8 = vrot.slane %v1248_v7, %v328_v3 }
 0x4c3   :  { %v1419_v9 = vpop.f32.mrf.mxu0 }
 0x4c4   :  { %v686_v9 = vrot.slane %v1248_v7, %v332_v5  ;;  %v1028_v7 = vld [vmem:[#allocation8 + $0xc0] sm:$0xff] }
 0x4c5   :  { %v585_v11 = vpop.f32.mrf.mxu0 }
 0x4c6   :  { %v586_v20 = vadd.f32 %v585_v11, %v538_v15 }
 0x4c7   :  { %v1420_v12 = vpop.f32.mrf.mxu0 }
 0x4c8   :  { %v597_v31 = vpack.c.bf16 %v586_v20, %v583_v26  ;;  %v1250_v26 = vld [vmem:[%s1947_s9 + $0x1] ss:$0 sm:$0xff] }
 0x4c9   :  { %v590_v14 = vpop.f32.mrf.mxu0 }
 0x4ca   :  { %v591_v10 = vadd.f32 %v590_v14, %v539_v13 }
 0x4cb   :  { %v1423_v16 = vpop.f32.mrf.mxu0 }
 0x4cc   :  { %v598_v19 = vpack.c.bf16 %v591_v10, %v591_v10 }
 0x4cd   :  { %v593_v21 = vpop.f32.mrf.mxu0 }
 0x4ce   :  { %v600_v25 = vsel %vm247_vm7, %v598_v19, 0 }
 0x4cf   :  { %v1424_v28 = vpop.f32.mrf.mxu0  ;;  %1426 = vmatpush3.bf16.msra.mxu1 %v600_v25 }
 0x4d0   :  { %1427 = vmatprep.subr.bf16.mxu1 %v1648_v1 }
 0x4d3   :  { %1428 = vmatpush3.bf16.msra.mxu1 %v597_v31 }
 0x4d4   :  { %1429 = vmatprep.subr.bf16.mxu1 %v1648_v1 }
 0x4d7   :  { %1430 = vmatpush3.bf16.msra.mxu1 %v596_v33 }
 0x4d8   :  { %1313 = vmatprep.subr.mxu1 %v802_v35 }
 0x4da   :  { %1432 = vmatmul.mubr.msk.bf16.vlgmr.msra.gmra.mxu1 %vm243_vm10, %v1811_v27  ;;  %v782_v27 = vld [vmem:[#allocation7 + $0x158] sm:$0xff] }
 0x4db   :  { %1314 = vmatpush3.msra.mxu1 %v786_v36  ;;  %v164_v36 = vsel %vm163_vm11, 1.0, %v1648_v1 }
 0x4dc   :  { %1315 = vmatprep.subr.mxu1 %v801_v37 }
 0x4dd   :  { %1316 = vmatpush3.msra.mxu1 %v785_v38  ;;  %v165_v38 = vpack.c.bf16 %v164_v36, %v164_v36 }
 0x4de   :  { %1317 = vmatprep.subr.mxu1 %v800_v39  ;;  %v932_v39 = vld [vmem:[%s1939_s1] sm:$0xff] }
 0x4df   :  { %1318 = vmatpush3.msra.mxu1 %v784_v18  ;;  %v935_v2 = vrot.slane %v932_v39, 4 }
 0x4e0   :  { %1319 = vmatprep.subr.mxu1 %v799_v40 }
 0x4e1   :  { %1320 = vmatpush3.msra.mxu1 %v783_v41  ;;  %v936_v18 = vadd.f32 %v935_v2, %v932_v39 }
 0x4e2   :  { %1321 = vmatprep.subr.mxu1 %v798_v22 }
 0x4e3   :  { %1322 = vmatpush3.msra.mxu1 %v782_v27  ;;  %v937_v40 = vrot.slane %v936_v18, 2 }
 0x4e4   :  { %1323 = vmatprep.subr.mxu1 %v797_v42 }
 0x4e5   :  { %1324 = vmatpush3.msra.mxu1 %v781_v43  ;;  %v938_v41 = vadd.f32 %v937_v40, %v936_v18 }
 0x4e6   :  { %1325 = vmatprep.subr.mxu1 %v796_v24 }
 0x4e7   :  { %1326 = vmatpush3.msra.mxu1 %v780_v44  ;;  %v939_v22 = vrot.slane %v938_v41, 1 }
 0x4e8   :  { %1327 = vmatprep.subr.mxu1 %v795_v45 }
 0x4e9   :  { %1328 = vmatpush3.msra.mxu1 %v779_v46  ;;  %v940_v27 = vadd.f32 %v939_v22, %v938_v41  ;;  %v1019_v46 = vld [vmem:[#allocation8 + $0x78] sm:$0xff] }
 0x4ea   :  { %1329 = vmatprep.subr.mxu1 %v794_v47 }
 0x4eb   :  { %1330 = vmatpush3.msra.mxu1 %v778_v48  ;;  %v942_v42 = vmul.f32 0.125, %v940_v27  ;;  %v1035_v48 = vld [vmem:[#allocation8 + $0xf8] sm:$0xff] }
 0x4ec   :  { %1331 = vmatprep.subr.mxu1 %v793_v49  ;;  %v1018_v49 = vld [vmem:[#allocation8 + $0x70] sm:$0xff] }
 0x4ed   :  { %1332 = vmatpush3.msra.mxu1 %v777_v50  ;;  %v1879_v43 = vsub.f32 %v932_v39, %v942_v42 }
 0x4ee   :  { %1333 = vmatprep.subr.mxu1 %v792_v51  ;;  %v1034_v51 = vld [vmem:[#allocation8 + $0xf0] sm:$0xff] }
 0x4ef   :  { %1334 = vmatpush3.msra.mxu1 %v776_v52  ;;  %v944_v24 = vmul.f32 %v1879_v43, %v1879_v43  ;;  %v1017_v52 = vld [vmem:[#allocation8 + $0x68] sm:$0xff] }
 0x4f0   :  { %1335 = vmatprep.subr.mxu1 %v791_v53 }
 0x4f1   :  { %1336 = vmatpush3.msra.mxu1 %v775_v54  ;;  %v945_v44 = vrot.slane %v944_v24, 4  ;;  %v1033_v54 = vld [vmem:[#allocation8 + $0xe8] sm:$0xff] }
 0x4f2   :  { %1337 = vmatprep.subr.mxu1 %v790_v59 }
 0x4f3   :  { %1338 = vmatpush3.msra.mxu1 %v774_v60  ;;  %v946_v45 = vadd.f32 %v945_v44, %v944_v24  ;;  %v1031_v60 = vld [vmem:[#allocation8 + $0xd8] sm:$0xff] }
 0x4f4   :  { %1339 = vmatprep.subr.mxu1 %v789_v61  ;;  %v1014_v61 = vld [vmem:[#allocation8 + $0x50] sm:$0xff] }
 0x4f5   :  { %1340 = vmatpush3.msra.mxu1 %v773_v62  ;;  %v947_v47 = vrot.slane %v946_v45, 2 }
 0x4f6   :  { %1341 = vmatprep.subr.mxu1 %v788_v63  ;;  %v1030_v63 = vld [vmem:[#allocation8 + $0xd0] sm:$0xff] }
 0x4f7   :  { %1342 = vmatpush3.msra.mxu1 %v772_v0  ;;  %v948_v50 = vadd.f32 %v947_v47, %v946_v45  ;;  %v1013_v0 = vld [vmem:[#allocation8 + $0x48] sm:$0xff] }
 0x4f8   :  { %1343 = vmatprep.subr.mxu1 %v787_v4  ;;  %v1029_v4 = vld [vmem:[#allocation8 + $0xc8] sm:$0xff] }
 0x4f9   :  { %1344 = vmatpush3.msra.mxu1 %v771_v6  ;;  %v949_v53 = vrot.slane %v948_v50, 1  ;;  %v1012_v6 = vld [vmem:[#allocation8 + $0x40] sm:$0xff] }
 0x4fa   :  { %1476 = vmatprep.subr.mxu1 %v1648_v1 }
 0x59a   :  { %v636_v55 = vpop.f32.mrf.mxu1 }
 0x59b   :  { %754 = vmatmul.mubr.f32.vlgmr.msra.gmra.mxu0 %v636_v55  ;;  %v1016_v55 = vld [vmem:[#allocation8 + $0x60] sm:$0xff] }
 0x59c   :  { %v1433_v56 = vpop.f32.mrf.mxu1  ;;  %759 = vmatprep.mubr.f32.mxu0 %v1648_v1 }
 0x59d   :  { %v950_v56 = vadd.f32 %v949_v53, %v948_v50  ;;  %v1255_v50 = vld [vmem:[%s1949_s11 + $0x1] ss:$0 sm:$0xff] }
 0x59e   :  { %v639_v57 = vpop.f32.mrf.mxu1 }
 0x59f   :  { %760 = vmatmul.mubr.f32.gmra.mxu0 %v639_v57  ;;  %v1032_v57 = vld [vmem:[#allocation8 + $0xe0] sm:$0xff]  ;;  %v951_v59 = vmul.f32 0.125, %v950_v56  ;;  %v1256_v56 = vld [vmem:[%s1951_s13] ss:$0 sm:$0xff] }
 0x5a0   :  { %v1434_v58 = vpop.f32.mrf.mxu1  ;;  %1437 = vmatprep.mubr.msk.bf16.mxu0 %vm1649_vm0, %v1648_v1 }
 0x5a1   :  { %v1015_v58 = vld [vmem:[#allocation8 + $0x58] sm:$0xff]  ;;  %v952_v62 = vadd.f32 1e-05, %v951_v59 }
 0x5a3   :  { %1525 = vrsqrt.f32 %v952_v62 }
 0x65b   :  { %v755_v11 = vpop.f32.mrf.mxu0 }
 0x65c   :  { %v756_v12 = vadd.f32 %v755_v11, %v682_v8  ;;  %v1010_v11 = vld [vmem:[#allocation8 + $0x30] sm:$0xff] }
 0x65d   :  { %v757_v13 = vpop.f32.mrf.mxu0 }
 0x65e   :  { %v758_v14 = vadd.f32 %v757_v13, %v686_v9  ;;  %v766_v16 = vmax.f32 %v756_v12, 0.0  ;;  %v1026_v12 = vld [vmem:[#allocation8 + $0xb0] sm:$0xff]  ;;  %v1009_v13 = vld [vmem:[#allocation8 + $0x28] sm:$0xff] }
 0x65f   :  { %v761_v15 = vpop.f32.mrf.mxu0 }
 0x660   :  { %v767_v10 = vmax.f32 %v758_v14, 0.0  ;;  %v762_v17 = vadd.f32 %v761_v15, %v682_v8  ;;  %v1011_v8 = vld [vmem:[#allocation8 + $0x38] sm:$0xff]  ;;  %v1025_v14 = vld [vmem:[#allocation8 + $0xa8] sm:$0xff]  ;;  %v1008_v15 = vld [vmem:[#allocation8 + $0x20] sm:$0xff] }
 0x661   :  { %v763_v19 = vpop.f32.mrf.mxu0 }
 0x662   :  { %v764_v20 = vadd.f32 %v763_v19, %v686_v9  ;;  %875 = vmatprep.mubr.f32.mxu1 %v767_v10  ;;  %v768_v23 = vmax.f32 %v762_v17, 0.0  ;;  %v1027_v9 = vld [vmem:[#allocation8 + $0xb8] sm:$0xff]  ;;  %v1024_v10 = vld [vmem:[#allocation8 + $0xa0] sm:$0xff]  ;;  %v1526_v17 = vpop.eup %1525 }
 0x663   :  { %876 = vmatmul.mubr.f32.vlgmr.msra.gmra.mxu1 %v766_v16  ;;  %v1007_v16 = vld [vmem:[#allocation8 + $0x18] sm:$0xff] }
 0x664   :  { %v769_v21 = vmax.f32 %v764_v20, 0.0  ;;  %1477 = vmatpush3.msra.mxu1 %v1019_v46  ;;  %v1023_v19 = vld [vmem:[#allocation8 + $0x98] sm:$0xff]  ;;  %v1006_v20 = vld [vmem:[#allocation8 + $0x10] sm:$0xff] }
 0x665   :  { %1478 = vmatprep.subr.mxu1 %v1648_v1 }
 0x666   :  { %880 = vmatprep.mubr.f32.mxu1 %v769_v21  ;;  %1479 = vmatpush3.msra.mxu1 %v1018_v49  ;;  %v954_v21 = vmul.f32 %v1526_v17, %v1879_v43 }
 0x667   :  { %881 = vmatmul.mubr.f32.gmra.mxu1 %v768_v23  ;;  %1480 = vmatprep.subr.mxu1 %v1648_v1  ;;  %v1252_v23 = vld [vmem:[%s1948_s10] ss:$0 sm:$0xff] }
 0x668   :  { %1508 = vmatprep.mubr.msk.f32.mxu1 %vm1649_vm0, %v1648_v1  ;;  %1481 = vmatpush3.msra.mxu1 %v1017_v52 }
 0x669   :  { %1482 = vmatprep.subr.mxu1 %v1648_v1 }
 0x66a   :  { %1483 = vmatpush3.msra.mxu1 %v1016_v55 }
 0x66b   :  { %1484 = vmatprep.subr.mxu1 %v1648_v1 }
 0x66c   :  { %1485 = vmatpush3.msra.mxu1 %v1015_v58 }
 0x66d   :  { %1486 = vmatprep.subr.mxu1 %v1648_v1 }
 0x66e   :  { %1487 = vmatpush3.msra.mxu1 %v1014_v61 }
 0x66f   :  { %1488 = vmatprep.subr.mxu1 %v1648_v1 }
 0x670   :  { %1489 = vmatpush3.msra.mxu1 %v1013_v0 }
 0x671   :  { %1490 = vmatprep.subr.mxu1 %v1648_v1 }
 0x672   :  { %1491 = vmatpush3.msra.mxu1 %v1012_v6 }
 0x673   :  { %1492 = vmatprep.subr.mxu1 %v1648_v1 }
 0x674   :  { %1493 = vmatpush3.msra.mxu1 %v1011_v8 }
 0x675   :  { %1494 = vmatprep.subr.mxu1 %v1648_v1 }
 0x676   :  { %1495 = vmatpush3.msra.mxu1 %v1010_v11 }
 0x677   :  { %1496 = vmatprep.subr.mxu1 %v1648_v1 }
 0x678   :  { %1497 = vmatpush3.msra.mxu1 %v1009_v13 }
 0x679   :  { %1498 = vmatprep.subr.mxu1 %v1648_v1 }
 0x67a   :  { %1499 = vmatpush3.msra.mxu1 %v1008_v15 }
 0x67b   :  { %1500 = vmatprep.subr.mxu1 %v1648_v1 }
 0x67c   :  { %1501 = vmatpush3.msra.mxu1 %v1007_v16 }
 0x67d   :  { %1502 = vmatprep.subr.mxu1 %v1648_v1 }
 0x67e   :  { %1503 = vmatpush3.msra.mxu1 %v1006_v20 }
 0x67f   :  { %1504 = vmatprep.subr.mxu1 %v1648_v1 }
 0x723   :  { %v1345_v3 = vpop.f32.mrf.mxu1 }
 0x725   :  { %v1346_v5 = vpop.f32.mrf.mxu1 }
 0x726   :  { %v1347_v25 = vadd.f32 %v1346_v5, %v1345_v3  ;;  %v1022_v3 = vld [vmem:[#allocation8 + $0x90] sm:$0xff]  ;;  %v1005_v5 = vld [vmem:[#allocation8 + $0x8] sm:$0xff] }
 0x727   :  { %v1348_v28 = vpop.f32.mrf.mxu1  ;;  %1505 = vmatpush3.msra.mxu1 %v1005_v5 }
 0x728   :  { %v878_v31 = vadd.f32 %v1347_v25, %v1250_v26  ;;  %v961_v25 = vmul.f32 %v1252_v23, %v954_v21  ;;  %1506 = vmatprep.subr.mxu1 %v1648_v1  ;;  %v1258_v21 = vld [vmem:[%s1953_s15] ss:$0 sm:$0xff] }
 0x729   :  { %v1349_v30 = vpop.f32.mrf.mxu1 }
 0x72a   :  { %v1350_v32 = vadd.f32 %v1349_v30, %v1348_v28  ;;  %v886_v34 = vmax.f32 %v878_v31, 0.0  ;;  %v1021_v28 = vld [vmem:[#allocation8 + $0x88] sm:$0xff]  ;;  %v1004_v30 = vld [vmem:[#allocation8] sm:$0xff] }
 0x72b   :  { %1507 = vmatpush3.msra.mxu1 %v1004_v30 }
 0x72c   :  { %v883_v33 = vadd.f32 %v1350_v32, %v1250_v26  ;;  %v1253_v26 = vld [vmem:[%s1949_s11] ss:$0 sm:$0xff] }
 0x72d   :  { %v968_v31 = vadd.f32 %v1253_v26, %v961_v25 }
 0x72e   :  { %v887_v35 = vmax.f32 %v883_v33, 0.0 }
 0x72f   :  { %1509 = vmatmul.mubr.f32.vlgmr.msra.gmra.mxu1 %v968_v31 }
 0x730   :  { %v888_v37 = vpack.c.bf16 %v887_v35, %v886_v34 }
 0x732   :  { %1436 = vmatpush3.bf16.msra.mxu0 %v888_v37 }
 0x733   :  { %1441 = vmatprep.subr.mxu0 %v1648_v1 }
 0x735   :  { %1438 = vmatmul.mubr.msk.bf16.vlgmr.msra.gmra.mxu0 %vm174_vm3, %v165_v38 }
 0x736   :  { %1473 = vmatprep.mubr.msk.f32.mxu0 %vm1649_vm0, %v1648_v1  ;;  %1442 = vmatpush3.msra.mxu0 %v1035_v48  ;;  %v1254_v48 = vld [vmem:[%s1948_s10 + $0x1] ss:$0 sm:$0xff] }
 0x737   :  { %1443 = vmatprep.subr.mxu0 %v1648_v1 }
 0x738   :  { %1444 = vmatpush3.msra.mxu0 %v1034_v51 }
 0x739   :  { %1445 = vmatprep.subr.mxu0 %v1648_v1 }
 0x73a   :  { %1446 = vmatpush3.msra.mxu0 %v1033_v54 }
 0x73b   :  { %1447 = vmatprep.subr.mxu0 %v1648_v1 }
 0x73c   :  { %1448 = vmatpush3.msra.mxu0 %v1032_v57 }
 0x73d   :  { %1449 = vmatprep.subr.mxu0 %v1648_v1 }
 0x73e   :  { %1450 = vmatpush3.msra.mxu0 %v1031_v60 }
 0x73f   :  { %1451 = vmatprep.subr.mxu0 %v1648_v1 }
 0x740   :  { %1452 = vmatpush3.msra.mxu0 %v1030_v63 }
 0x741   :  { %1453 = vmatprep.subr.mxu0 %v1648_v1 }
 0x742   :  { %1454 = vmatpush3.msra.mxu0 %v1029_v4 }
 0x743   :  { %1455 = vmatprep.subr.mxu0 %v1648_v1 }
 0x744   :  { %1456 = vmatpush3.msra.mxu0 %v1028_v7 }
 0x745   :  { %1457 = vmatprep.subr.mxu0 %v1648_v1 }
 0x746   :  { %1458 = vmatpush3.msra.mxu0 %v1027_v9 }
 0x747   :  { %1459 = vmatprep.subr.mxu0 %v1648_v1 }
 0x748   :  { %1460 = vmatpush3.msra.mxu0 %v1026_v12 }
 0x749   :  { %1461 = vmatprep.subr.mxu0 %v1648_v1 }
 0x74a   :  { %1462 = vmatpush3.msra.mxu0 %v1025_v14 }
 0x74b   :  { %1463 = vmatprep.subr.mxu0 %v1648_v1 }
 0x74c   :  { %1464 = vmatpush3.msra.mxu0 %v1024_v10 }
 0x74d   :  { %1465 = vmatprep.subr.mxu0 %v1648_v1 }
 0x74e   :  { %1466 = vmatpush3.msra.mxu0 %v1023_v19  ;;  %v1257_v19 = vld [vmem:[%s1952_s14] ss:$0 sm:$0xff] }
 0x74f   :  { %1467 = vmatprep.subr.mxu0 %v1648_v1 }
 0x750   :  { %1468 = vmatpush3.msra.mxu0 %v1022_v3 }
 0x751   :  { %1469 = vmatprep.subr.mxu0 %v1648_v1 }
 0x752   :  { %1470 = vmatpush3.msra.mxu0 %v1021_v28 }
 0x753   :  { %1471 = vmatprep.subr.mxu0 %v1648_v1 }
 0x754   :  { %1472 = vmatpush3.msra.mxu0 %v1020_v29 }
 0x7ef   :  { %v1172_v53 = vpop.f32.mrf.mxu1 }
 0x7f1   :  { %v1510_v54 = vpop.f32.mrf.mxu1 }
 0x7f5   :  { %v926_v32 = vpop.f32.mrf.mxu0 }
 0x7f6   :  { %v971_v33 = vrot.slane %v926_v32, 4 }
 0x7f7   :  { %v1439_v34 = vpop.f32.mrf.mxu0 }
 0x7f8   :  { %v972_v35 = vadd.f32 %v971_v33, %v926_v32 }
 0x7f9   :  { %v929_v36 = vpop.f32.mrf.mxu0 }
 0x7fa   :  { %v973_v37 = vrot.slane %v972_v35, 2 }
 0x7fb   :  { %v1440_v38 = vpop.f32.mrf.mxu0 }
 0x7fc   :  { %v974_v39 = vadd.f32 %v973_v37, %v972_v35 }
 0x7fe   :  { %v975_v2 = vrot.slane %v974_v39, 1 }
 0x800   :  { %v976_v18 = vadd.f32 %v975_v2, %v974_v39 }
 0x802   :  { %v977_v40 = vmul.f32 0.125, %v976_v18 }
 0x804   :  { %v978_v41 = vsub.f32 %v926_v32, %v977_v40 }
 0x806   :  { %v979_v22 = vmul.f32 %v978_v41, %v978_v41 }
 0x808   :  { %v980_v27 = vrot.slane %v979_v22, 4 }
 0x80a   :  { %v981_v42 = vadd.f32 %v980_v27, %v979_v22 }
 0x80c   :  { %v982_v43 = vrot.slane %v981_v42, 2 }
 0x80e   :  { %v983_v24 = vadd.f32 %v982_v43, %v981_v42 }
 0x810   :  { %v984_v1 = vrot.slane %v983_v24, 1 }
 0x812   :  { %v985_v44 = vadd.f32 %v984_v1, %v983_v24 }
 0x814   :  { %v986_v45 = vmul.f32 0.125, %v985_v44 }
 0x816   :  { %v987_v46 = vadd.f32 1e-05, %v986_v45 }
 0x818   :  { %1527 = vrsqrt.f32 %v987_v46 }
 0x825   :  { %v1528_v47 = vpop.eup %1527 }
 0x826   :  { %v989_v49 = vmul.f32 %v1528_v47, %v978_v41 }
 0x828   :  { %v996_v51 = vmul.f32 %v1254_v48, %v989_v49 }
 0x82a   :  { %v1003_v52 = vadd.f32 %v1255_v50, %v996_v51 }
 0x82c   :  { %1474 = vmatmul.mubr.f32.vlgmr.msra.gmra.mxu0 %v1003_v52 }
 0x8ec   :  { %v1102_v55 = vpop.f32.mrf.mxu0 }
 0x8ed   :  { %v1173_v57 = vadd.f32 %v1172_v53, %v1102_v55 }
 0x8ee   :  { %v1475_v58 = vpop.f32.mrf.mxu0 }
 0x8ef   :  { %v1183_v59 = vadd.f32 %v1256_v56, %v1173_v57 }
 0x8f1   :  { %v1186_v60 = vrot.slane %v1183_v59, 4 }
 0x8f3   :  { %v1187_v61 = vadd.f32 %v1186_v60, %v1183_v59 }
 0x8f5   :  { %v1188_v62 = vrot.slane %v1187_v61, 2 }
 0x8f7   :  { %v1189_v63 = vadd.f32 %v1188_v62, %v1187_v61 }
 0x8f9   :  { %v1190_v0 = vrot.slane %v1189_v63, 1 }
 0x8fb   :  { %v1191_v4 = vadd.f32 %v1190_v0, %v1189_v63 }
 0x8fd   :  { %v1192_v6 = vmul.f32 0.125, %v1191_v4 }
 0x8ff   :  { %v1193_v7 = vsub.f32 %v1183_v59, %v1192_v6 }
 0x901   :  { %v1194_v8 = vmul.f32 %v1193_v7, %v1193_v7 }
 0x903   :  { %v1195_v9 = vrot.slane %v1194_v8, 4 }
 0x905   :  { %v1196_v11 = vadd.f32 %v1195_v9, %v1194_v8 }
 0x907   :  { %v1197_v12 = vrot.slane %v1196_v11, 2 }
 0x909   :  { %v1198_v13 = vadd.f32 %v1197_v12, %v1196_v11 }
 0x90b   :  { %v1199_v14 = vrot.slane %v1198_v13, 1 }
 0x90d   :  { %v1200_v15 = vadd.f32 %v1199_v14, %v1198_v13 }
 0x90f   :  { %v1201_v10 = vmul.f32 0.125, %v1200_v15 }
 0x911   :  { %v1202_v16 = vadd.f32 1e-05, %v1201_v10 }
 0x913   :  { %1529 = vrsqrt.f32 %v1202_v16 }
 0x920   :  { %v1530_v17 = vpop.eup %1529 }
 0x921   :  { %v1204_v20 = vmul.f32 %v1530_v17, %v1193_v7 }
 0x923   :  { %v1211_v23 = vmul.f32 %v1257_v19, %v1204_v20 }
 0x925   :  { %v1218_v3 = vadd.f32 %v1258_v21, %v1211_v23 }
 0x927   :  { %1219 = vst [vmem:[#allocation10] sm:$0xff] %v1218_v3 }
 0x928   :  { %1622 = shalt.err (!%p1619_p10)
}
 0x929   :  { %1229 = dma.vmem_to_hbm [thread:$0]  %s1227_s25, 128, %s1954_s16, [#allocation4]  }
 0x92a   :  { %1637 = dma.done.wait [#allocation4], 128  }
 0x92b   :  { %1638 = vsyncadd [#allocation4], 4294967168 }
 0x92c   :  { %1233 = vsyncpa [#allocation3], 1 }
 0x92d   :  { %1234 = vsyncpa [#allocation6], 1 }
 0x92e   :  { %1235 = vsyncpa [#allocation9], 1 }
 0x92f   :  { %1236 = vsyncpa [#allocation4], 1 }

</bundles_post_ra>
